<compile_context>
chip_gen: v6e
topology: v6e:2x2x1
jax: 0.10.0
libtpu: 0.0.40
codegen_flags: <defaults>
</compile_context>

<pallas_src>
import functools

import numpy as np
import jax
import jax.numpy as jnp
from jax.experimental import pallas as pl
from jax.experimental.pallas import tpu as pltpu

F_PAD = 128       # padded feature width (lane-dense, minimum lane tile)
ROW_CHUNK = 256   # rows processed per in-kernel chunk (activation chain in vregs)


# ----------------------------------------------------------------------------
# Pallas kernel: whole BreezeForest stack fused over one batch tile.
# ----------------------------------------------------------------------------
def _breezeforest_kernel(x_ref, sapw_ref, mask_ref, w_ref, b_ref, o_ref, h0_ref,
                         *, n_layers, dim, n_chunks, row_chunk):
    mask = mask_ref[...]                              # (1, dim) f32
    sapw = sapw_ref[...]                              # (1, dim) f32
    w_in = mask * (1.0 - sapw)                        # folded input scale
    w_skip = mask * sapw                              # folded sapling-skip scale

    # Zero the layer-0 staging slab once per grid step.  Lanes [dim, F_PAD) must
    # be exactly 0 (padded rows of W0 are exactly 0, so 0*0 never leaks).  Doing
    # it every step (16 bf16 vregs) also guards against stale VMEM on the first
    # step of *each* TensorCore (a program_id==0 guard would miss core 1 on v7x).
    h0_ref[...] = jnp.zeros_like(h0_ref)

    for c in range(n_chunks):                         # static unroll -> static slices
        r0 = c * row_chunk

        # Stage the lane-padded bf16 layer-0 input: live lanes [0, dim), zeros after.
        xc = x_ref[pl.ds(r0, row_chunk), :]           # (RC, dim) f32
        h0_ref[:, 0:dim] = (xc * w_in).astype(jnp.bfloat16)

        # Layer chain carried as values (no per-layer VMEM round trip).  bf16
        # operands feed the native MXU path; f32 accumulation, bias + sigmoid
        # stay in f32 (v5e has no bf16 VPU/EUP).
        z = jnp.dot(h0_ref[...], w_ref[0],
                    preferred_element_type=jnp.float32) + b_ref[0]
        acts = jax.nn.sigmoid(z)                      # (RC, F_PAD) f32
        for l in range(1, n_layers):
            z = jnp.dot(acts.astype(jnp.bfloat16), w_ref[l],
                        preferred_element_type=jnp.float32) + b_ref[l]
            acts = jax.nn.sigmoid(z)

        # Only the first `dim` lanes are real outputs: sapling skip + mask, then a
        # narrow (RC, dim) store -> 32x less HBM writeback than a padded slab.
        x_init = x_ref[pl.ds(r0, row_chunk), :] * w_skip
        o_ref[pl.ds(r0, row_chunk), :] = (
            (acts[:, 0:dim] + x_init) * mask).astype(o_ref.dtype)


def _round_up(a, m):
    return ((a + m - 1) // m) * m


def breezeforest_forward(x, sapling_logits, dim_mask, w_stacked, b_stacked,
                         *, batch_tile=2048, row_chunk=ROW_CHUNK):
    """x: (B, dim) float32.  Returns (B, dim) float32."""
    B, dim = x.shape
    L = w_stacked.shape[0]
    assert row_chunk % 16 == 0  # bf16 sublane tiling for the staging scratch

    # Batch tile: large (1-4K rows) so each grid step carries enough matmul work
    # to hide the ~0.35us per-grid-step pipeline overhead, but capped at
    # ceil(B/2) so the grid keeps >= 2 steps whenever B allows it (v7x shards a
    # "parallel" grid axis across its 2 TensorCores; a 1-step grid idles one).
    bt = min(batch_tile, max(row_chunk, _round_up(pl.cdiv(B, 2), row_chunk)))
    bt = _round_up(bt, row_chunk)
    n_tiles = pl.cdiv(B, bt)
    b_pad = n_tiles * bt
    if b_pad != B:
        x = jnp.pad(x, ((0, b_pad - B), (0, 0)))      # padded rows sliced off below

    sapw = jax.nn.sigmoid(sapling_logits).astype(jnp.float32)   # (1, dim)
    dim_mask = dim_mask.astype(jnp.float32)
    w_bf16 = w_stacked.astype(jnp.bfloat16)                     # bf16 MXU operands
    b_f32 = b_stacked.astype(jnp.float32)

    cost = pl.CostEstimate(
        flops=2 * b_pad * L * F_PAD * F_PAD,
        transcendentals=b_pad * L * F_PAD,
        bytes_accessed=(b_pad * dim * 4 * 2            # x in + out (narrow)
                        + L * F_PAD * F_PAD * 2        # bf16 weights
                        + L * F_PAD * 4                # biases
                        + 2 * dim * 4))                # sapw + dim_mask

    # Per-step VMEM: x/out blocks (bt*dim*4 B each, double-buffered), weights
    # L*128*128*2 B bf16, biases, plus the (row_chunk,128) bf16 staging slab —
    # ~0.5 MiB at bt=2048, far below the 16/32/32 MiB scoped defaults on
    # v5e/v6e/v7x, so vmem_limit_bytes is left at its default.
    out = pl.pallas_call(
        functools.partial(_breezeforest_kernel, n_layers=L, dim=dim,
                          n_chunks=bt // row_chunk, row_chunk=row_chunk),
        out_shape=jax.ShapeDtypeStruct((b_pad, dim), jnp.float32),
        grid_spec=pltpu.PrefetchScalarGridSpec(
            num_scalar_prefetch=0,
            grid=(n_tiles,),
            in_specs=[
                pl.BlockSpec((bt, dim), lambda i: (i, 0)),             # x (B, dim)
                pl.BlockSpec((1, dim), lambda i: (0, 0)),              # sapw
                pl.BlockSpec((1, dim), lambda i: (0, 0)),              # dim_mask
                pl.BlockSpec((L, F_PAD, F_PAD), lambda i: (0, 0, 0)),  # weights bf16
                pl.BlockSpec((L, 1, F_PAD), lambda i: (0, 0, 0)),      # biases f32
            ],
            out_specs=pl.BlockSpec((bt, dim), lambda i: (i, 0)),
            scratch_shapes=[pltpu.VMEM((row_chunk, F_PAD), jnp.bfloat16)],
        ),
        compiler_params=pltpu.CompilerParams(
            dimension_semantics=("parallel",)),
        cost_estimate=cost,
    )(x, sapw, dim_mask, w_bf16, b_f32)

    return out[:B]


# ----------------------------------------------------------------------------
# Deterministic parameter construction (synthetic init, no checkpoint).
# ----------------------------------------------------------------------------
def init_params(key, dim, widths, sap_w=0.1):
    """widths: per-depth per-dim widths, e.g. [1, 8, 16, 1] (same for all dims)."""
    depth = len(widths)
    n_layers = depth - 1
    keys = jax.random.split(key, 4 * n_layers)
    sapling_logits = jnp.log(jnp.full((1, dim), sap_w, jnp.float32)
                             / (1.0 - sap_w))          # logit(sap_w)
    layers = []
    ki = 0
    for l in range(n_layers):
        fin, fout = widths[l], widths[l + 1]
        tin, tout = dim * fin, dim * fout
        layers.append(dict(
            tree_raw=jax.random.normal(keys[ki + 0], (dim, fin, fout),
                                       jnp.float32) * 0.5,
            breeze_raw=jax.random.normal(keys[ki + 1], (tin, tout),
                                         jnp.float32) * 0.1,
            bias=jax.random.normal(keys[ki + 2], (1, tout), jnp.float32) * 0.1,
            scale_raw=jax.random.normal(keys[ki + 3], (1, tout),
                                        jnp.float32) * 0.1,
        ))
        ki += 4
    return sapling_logits, layers


def build_layer_matrices(dim, widths, layers):
    """Fold tree (block-diag, positive) + breeze (strict lower-block) weights,
    bias and scale into a single effective matmul per layer."""
    Ws, Bs = [], []
    for l, p in enumerate(layers):
        fin, fout = widths[l], widths[l + 1]
        tin, tout = dim * fin, dim * fout
        tree_pos = jax.nn.softplus(p["tree_raw"])      # monotone: positive weights
        W = jnp.zeros((tin, tout), jnp.float32)
        for d in range(dim):                           # block diagonal
            W = W.at[d * fin:(d + 1) * fin, d * fout:(d + 1) * fout].set(tree_pos[d])
        # breeze: inputs of dim d' only influence outputs of dim d if d' < d
        row_dim = np.repeat(np.arange(dim), fin)
        col_dim = np.repeat(np.arange(dim), fout)
        mask = jnp.asarray((row_dim[:, None] < col_dim[None, :]).astype(np.float32))
        W = W + p["breeze_raw"] * mask
        scale = jax.nn.softplus(p["scale_raw"])        # positive scale
        Ws.append(W * scale)                           # fold scale into W / bias
        Bs.append(p["bias"] * scale)
    return Ws, Bs


def pad_stack(Ws, Bs, f_pad):
    """Zero-pad each layer to (f_pad, f_pad) and stack.  Padded weight rows MUST
    stay exactly zero so padded lanes (which carry sigmoid(0)=0.5) never leak."""
    L = len(Ws)
    Wp = jnp.zeros((L, f_pad, f_pad), jnp.float32)
    Bp = jnp.zeros((L, 1, f_pad), jnp.float32)
    for l in range(L):
        tin, tout = Ws[l].shape
        Wp = Wp.at[l, :tin, :tout].set(Ws[l])
        Bp = Bp.at[l, :, :tout].set(Bs[l])
    return Wp, Bp


# ----------------------------------------------------------------------------
# Pure-JAX reference (unpadded) for correctness check.
#   matmul_dtype=None      -> original f32 semantics
#   matmul_dtype=bfloat16  -> mirrors the kernel's mixed precision exactly
# ----------------------------------------------------------------------------
def reference_forward(x, sapling_logits, dim_mask, Ws, Bs, matmul_dtype=None):
    x = x * dim_mask
    sapw = jax.nn.sigmoid(sapling_logits)
    x_init = x * sapw
    h = x * (1.0 - sapw)
    L = len(Ws)
    for l in range(L):
        if matmul_dtype is not None:
            z = jnp.dot(h.astype(matmul_dtype), Ws[l].astype(matmul_dtype),
                        preferred_element_type=jnp.float32) + Bs[l]
        else:
            z = h @ Ws[l] + Bs[l]
        h = jax.nn.sigmoid(z)
        if l == L - 1:
            h = h + x_init                              # sapling skip on last layer
    return h * dim_mask


if __name__ == "__main__":
    dim, batch = 4, 512
    widths = [1, 8, 16, 1]          # per-dim tree widths (depth = 4 -> 3 TreeLayers)

    key = jax.random.PRNGKey(0)
    k_x, k_p = jax.random.split(key)
    x = jax.random.normal(k_x, (batch, dim), dtype=jnp.float32)

    sapling_logits, layers = init_params(k_p, dim, widths)
    dim_mask = jnp.ones((1, dim), jnp.float32)
    Ws, Bs = build_layer_matrices(dim, widths, layers)
    Wp, Bp = pad_stack(Ws, Bs, F_PAD)

    # Wrapper caps the tile to ceil(B/2)=256 rows -> grid of 2 (both v7x TCs fed).
    out = breezeforest_forward(x, sapling_logits, dim_mask, Wp, Bp)
    out = jax.block_until_ready(out)

    # Tight check against a reference with the same mixed precision as the kernel.
    ref_mixed = reference_forward(x, sapling_logits, dim_mask, Ws, Bs,
                                  matmul_dtype=jnp.bfloat16)
    np.testing.assert_allclose(np.asarray(out), np.asarray(ref_mixed),
                               rtol=2e-3, atol=2e-3)

    # Loose sanity check against the pure-f32 reference (bf16 matmul rounding only).
    ref_f32 = reference_forward(x, sapling_logits, dim_mask, Ws, Bs)
    np.testing.assert_allclose(np.asarray(out), np.asarray(ref_f32),
                               rtol=5e-2, atol=5e-2)

    print("KERNEL_OK")
</pallas_src>

<mosaic_0001>
module attributes {stable_mosaic.version = 11 : i64} {
  func.func @_breezeforest_kernel(%arg0: i32, %arg1: memref<256x4xf32, #tpu.memory_space<vmem>>, %arg2: memref<1x4xf32, #tpu.memory_space<vmem>>, %arg3: memref<1x4xf32, #tpu.memory_space<vmem>>, %arg4: memref<3x128x128xbf16, #tpu.memory_space<vmem>>, %arg5: memref<3x1x128xf32, #tpu.memory_space<vmem>>, %arg6: memref<256x4xf32, #tpu.memory_space<vmem>>, %arg7: memref<256x128xbf16, #tpu.memory_space<vmem>>) attributes {dimension_semantics = [#tpu.dimension_semantics<parallel>], iteration_bounds = array<i64: 2>, scalar_prefetch = 0 : i64, scratch_operands = 1 : i64, tpu.core_type = #tpu.core_type<tc>, window_params = [{transform_indices = @transform_0, window_bounds = array<i64: 256, 4>}, {pipeline_mode = #tpu.pipeline_mode<synchronous>, transform_indices = @transform_1, window_bounds = array<i64: 1, 4>}, {pipeline_mode = #tpu.pipeline_mode<synchronous>, transform_indices = @transform_2, window_bounds = array<i64: 1, 4>}, {pipeline_mode = #tpu.pipeline_mode<synchronous>, transform_indices = @transform_3, window_bounds = array<i64: 3, 128, 128>}, {pipeline_mode = #tpu.pipeline_mode<synchronous>, transform_indices = @transform_4, window_bounds = array<i64: 3, 1, 128>}, {transform_indices = @transform_5, window_bounds = array<i64: 256, 4>}]} {
    %c0 = arith.constant 0 : index
    %c0_0 = arith.constant 0 : index
    %0 = vector.load %arg3[%c0, %c0_0] : memref<1x4xf32, #tpu.memory_space<vmem>>, vector<1x4xf32>
    %c0_1 = arith.constant 0 : index
    %c0_2 = arith.constant 0 : index
    %1 = vector.load %arg2[%c0_1, %c0_2] : memref<1x4xf32, #tpu.memory_space<vmem>>, vector<1x4xf32>
    %cst = arith.constant 1.000000e+00 : f32
    %2 = vector.broadcast %cst : f32 to vector<1x4xf32>
    %3 = arith.subf %2, %1 : vector<1x4xf32>
    %4 = arith.mulf %0, %3 : vector<1x4xf32>
    %5 = arith.mulf %0, %1 : vector<1x4xf32>
    %cst_3 = arith.constant 0.000000e+00 : bf16
    %6 = vector.broadcast %cst_3 : bf16 to vector<256x128xbf16>
    %c0_4 = arith.constant 0 : index
    %c0_5 = arith.constant 0 : index
    %7 = vector.load %arg7[%c0_4, %c0_5] : memref<256x128xbf16, #tpu.memory_space<vmem>>, vector<256x128xbf16>
    tpu.vector_store %arg7[%c0_4, %c0_5], %6 {strides = array<i32>} : memref<256x128xbf16, #tpu.memory_space<vmem>>, vector<256x128xbf16>,
    %c0_6 = arith.constant 0 : index
    %c0_7 = arith.constant 0 : index
    %8 = vector.load %arg1[%c0_6, %c0_7] : memref<256x4xf32, #tpu.memory_space<vmem>>, vector<256x4xf32>
    %9 = vector.broadcast %4 : vector<1x4xf32> to vector<256x4xf32>
    %10 = arith.mulf %8, %9 : vector<256x4xf32>
    %11 = arith.truncf %10 : vector<256x4xf32> to vector<256x4xbf16>
    %c0_8 = arith.constant 0 : index
    %c0_9 = arith.constant 0 : index
    %12 = vector.load %arg7[%c0_8, %c0_9] : memref<256x128xbf16, #tpu.memory_space<vmem>>, vector<256x4xbf16>
    tpu.vector_store %arg7[%c0_8, %c0_9], %11 {strides = array<i32>} : memref<256x128xbf16, #tpu.memory_space<vmem>>, vector<256x4xbf16>,
    %c0_10 = arith.constant 0 : index
    %c0_11 = arith.constant 0 : index
    %13 = vector.load %arg7[%c0_10, %c0_11] : memref<256x128xbf16, #tpu.memory_space<vmem>>, vector<256x128xbf16>
    %c0_12 = arith.constant 0 : index
    %c0_13 = arith.constant 0 : index
    %c0_14 = arith.constant 0 : index
    %14 = vector.load %arg4[%c0_12, %c0_13, %c0_14] : memref<3x128x128xbf16, #tpu.memory_space<vmem>>, vector<1x128x128xbf16>
    %15 = vector.shape_cast %14 : vector<1x128x128xbf16> to vector<128x128xbf16>
    %cst_15 = arith.constant dense<0.000000e+00> : vector<256x128xf32>
    %16 = tpu.matmul %13, %15, %cst_15 {dimension_numbers = #tpu.dot_dimension_numbers<[1], [0], [0], [1], [0, 0, 1, 1], [], []>} : vector<256x128xbf16>, vector<128x128xbf16>, vector<256x128xf32> -> vector<256x128xf32>
    %c0_16 = arith.constant 0 : index
    %c0_17 = arith.constant 0 : index
    %c0_18 = arith.constant 0 : index
    %17 = vector.load %arg5[%c0_16, %c0_17, %c0_18] : memref<3x1x128xf32, #tpu.memory_space<vmem>>, vector<1x1x128xf32>
    %18 = vector.shape_cast %17 : vector<1x1x128xf32> to vector<1x128xf32>
    %19 = vector.broadcast %18 : vector<1x128xf32> to vector<256x128xf32>
    %20 = arith.addf %16, %19 : vector<256x128xf32>
    %21 = arith.negf %20 : vector<256x128xf32>
    %22 = math.exp %21 : vector<256x128xf32>
    %cst_19 = arith.constant 1.000000e+00 : f32
    %23 = vector.broadcast %cst_19 : f32 to vector<256x128xf32>
    %24 = arith.addf %23, %22 : vector<256x128xf32>
    %25 = arith.divf %23, %24 : vector<256x128xf32>
    %26 = arith.truncf %25 : vector<256x128xf32> to vector<256x128xbf16>
    %c1 = arith.constant 1 : index
    %c0_20 = arith.constant 0 : index
    %c0_21 = arith.constant 0 : index
    %27 = vector.load %arg4[%c1, %c0_20, %c0_21] : memref<3x128x128xbf16, #tpu.memory_space<vmem>>, vector<1x128x128xbf16>
    %28 = vector.shape_cast %27 : vector<1x128x128xbf16> to vector<128x128xbf16>
    %cst_22 = arith.constant dense<0.000000e+00> : vector<256x128xf32>
    %29 = tpu.matmul %26, %28, %cst_22 {dimension_numbers = #tpu.dot_dimension_numbers<[1], [0], [0], [1], [0, 0, 1, 1], [], []>} : vector<256x128xbf16>, vector<128x128xbf16>, vector<256x128xf32> -> vector<256x128xf32>
    %c1_23 = arith.constant 1 : index
    %c0_24 = arith.constant 0 : index
    %c0_25 = arith.constant 0 : index
    %30 = vector.load %arg5[%c1_23, %c0_24, %c0_25] : memref<3x1x128xf32, #tpu.memory_space<vmem>>, vector<1x1x128xf32>
    %31 = vector.shape_cast %30 : vector<1x1x128xf32> to vector<1x128xf32>
    %32 = vector.broadcast %31 : vector<1x128xf32> to vector<256x128xf32>
    %33 = arith.addf %29, %32 : vector<256x128xf32>
    %34 = arith.negf %33 : vector<256x128xf32>
    %35 = math.exp %34 : vector<256x128xf32>
    %cst_26 = arith.constant 1.000000e+00 : f32
    %36 = vector.broadcast %cst_26 : f32 to vector<256x128xf32>
    %37 = arith.addf %36, %35 : vector<256x128xf32>
    %38 = arith.divf %36, %37 : vector<256x128xf32>
    %39 = arith.truncf %38 : vector<256x128xf32> to vector<256x128xbf16>
    %c2 = arith.constant 2 : index
    %c0_27 = arith.constant 0 : index
    %c0_28 = arith.constant 0 : index
    %40 = vector.load %arg4[%c2, %c0_27, %c0_28] : memref<3x128x128xbf16, #tpu.memory_space<vmem>>, vector<1x128x128xbf16>
    %41 = vector.shape_cast %40 : vector<1x128x128xbf16> to vector<128x128xbf16>
    %cst_29 = arith.constant dense<0.000000e+00> : vector<256x128xf32>
    %42 = tpu.matmul %39, %41, %cst_29 {dimension_numbers = #tpu.dot_dimension_numbers<[1], [0], [0], [1], [0, 0, 1, 1], [], []>} : vector<256x128xbf16>, vector<128x128xbf16>, vector<256x128xf32> -> vector<256x128xf32>
    %c2_30 = arith.constant 2 : index
    %c0_31 = arith.constant 0 : index
    %c0_32 = arith.constant 0 : index
    %43 = vector.load %arg5[%c2_30, %c0_31, %c0_32] : memref<3x1x128xf32, #tpu.memory_space<vmem>>, vector<1x1x128xf32>
    %44 = vector.shape_cast %43 : vector<1x1x128xf32> to vector<1x128xf32>
    %45 = vector.broadcast %44 : vector<1x128xf32> to vector<256x128xf32>
    %46 = arith.addf %42, %45 : vector<256x128xf32>
    %47 = arith.negf %46 : vector<256x128xf32>
    %48 = math.exp %47 : vector<256x128xf32>
    %cst_33 = arith.constant 1.000000e+00 : f32
    %49 = vector.broadcast %cst_33 : f32 to vector<256x128xf32>
    %50 = arith.addf %49, %48 : vector<256x128xf32>
    %51 = arith.divf %49, %50 : vector<256x128xf32>
    %c0_34 = arith.constant 0 : index
    %c0_35 = arith.constant 0 : index
    %52 = vector.load %arg1[%c0_34, %c0_35] : memref<256x4xf32, #tpu.memory_space<vmem>>, vector<256x4xf32>
    %53 = vector.broadcast %5 : vector<1x4xf32> to vector<256x4xf32>
    %54 = arith.mulf %52, %53 : vector<256x4xf32>
    %55 = vector.extract_strided_slice %51 {offsets = [0, 0], sizes = [256, 4], strides = [1, 1]} : vector<256x128xf32> to vector<256x4xf32>
    %56 = arith.addf %55, %54 : vector<256x4xf32>
    %57 = vector.broadcast %0 : vector<1x4xf32> to vector<256x4xf32>
    %58 = arith.mulf %56, %57 : vector<256x4xf32>
    %c0_36 = arith.constant 0 : index
    %c0_37 = arith.constant 0 : index
    %59 = vector.load %arg6[%c0_36, %c0_37] : memref<256x4xf32, #tpu.memory_space<vmem>>, vector<256x4xf32>
    tpu.vector_store %arg6[%c0_36, %c0_37], %58 {strides = array<i32>} : memref<256x4xf32, #tpu.memory_space<vmem>>, vector<256x4xf32>,
    return
  }
  func.func @transform_0(%arg0: i32) -> (i32, i32) {
    %c0_i32 = arith.constant 0 : i32
    %c0_i32_0 = arith.constant 0 : i32
    return %arg0, %c0_i32 : i32, i32
  }
  func.func @transform_1(%arg0: i32) -> (i32, i32) {
    %c0_i32 = arith.constant 0 : i32
    %c0_i32_0 = arith.constant 0 : i32
    %c0_i32_1 = arith.constant 0 : i32
    return %c0_i32, %c0_i32_0 : i32, i32
  }
  func.func @transform_2(%arg0: i32) -> (i32, i32) {
    %c0_i32 = arith.constant 0 : i32
    %c0_i32_0 = arith.constant 0 : i32
    %c0_i32_1 = arith.constant 0 : i32
    return %c0_i32, %c0_i32_0 : i32, i32
  }
  func.func @transform_3(%arg0: i32) -> (i32, i32, i32) {
    %c0_i32 = arith.constant 0 : i32
    %c0_i32_0 = arith.constant 0 : i32
    %c0_i32_1 = arith.constant 0 : i32
    %c0_i32_2 = arith.constant 0 : i32
    return %c0_i32, %c0_i32_0, %c0_i32_1 : i32, i32, i32
  }
  func.func @transform_4(%arg0: i32) -> (i32, i32, i32) {
    %c0_i32 = arith.constant 0 : i32
    %c0_i32_0 = arith.constant 0 : i32
    %c0_i32_1 = arith.constant 0 : i32
    %c0_i32_2 = arith.constant 0 : i32
    return %c0_i32, %c0_i32_0, %c0_i32_1 : i32, i32, i32
  }
  func.func @transform_5(%arg0: i32) -> (i32, i32) {
    %c0_i32 = arith.constant 0 : i32
    %c0_i32_0 = arith.constant 0 : i32
    return %arg0, %c0_i32 : i32, i32
  }
}

</mosaic_0001>

<bundles_post_ra>
// kernel: tpu_custom_call.1
= control target key start
LH: loop header
LB: loop body
LE: loop exit
PB: predicated region body
PF: predicated region fallthrough
CT: control target
= control target key end

     0   :  { %s3116_s18 = smov 0   ;;  %s3660_s0 = inlined_call_operand.vmem [shape: f32[512,4], index: 0, kind: input, shape index: {}]   ;;  %s3661_s1 = inlined_call_operand.vmem [shape: f32[1,4], index: 1, kind: input, shape index: {}]   ;;  %s3662_s2 = inlined_call_operand.vmem [shape: f32[1,4], index: 2, kind: input, shape index: {}]   ;;  %s3663_s3 = inlined_call_operand.vmem [shape: bf16[3,128,128], index: 3, kind: input, shape index: {}]   ;;  %s3664_s4 = inlined_call_operand.vmem [shape: f32[3,1,128], index: 4, kind: input, shape index: {}]   ;;  %s3665_s5 = inlined_call_operand.vmem [shape: f32[512,4], index: 5, kind: output, shape index: {}]  }
   0x1 LB: > { %s2162_s19 = sadd.s32 4294967295, %s3083_s18   ;;  %p2166_p0 = scmp.ge.s32.totalorder %s3083_s18, 1  ;;  %s3083_s18 = sphi %s3116_s18, %s15_s18  }
   0x2   : > { %p188_p1 = scmp.lt.s32.totalorder %s3083_s18, 3 }
   0x4   : > { %p189_p2 = pnand %p2166_p0, %p188_p1 }
   0x5   : > { %s2167_s22 = sshll.u32 (!%p189_p2), %s2162_s19, 5 }
   0x6   : > { %192 = sbr.rel (%p189_p2) target bundleno = 818 (0x332), region = 40  ;;  %p217_p3 = scmp.lt.s32.totalorder (!%p189_p2), %s2167_s22, 63 }
   0xb   : > { %v2651_v0 = vld [vmem:[%s3663_s3 + $0x38] sm:$0xff]   ;;  %v2652_v1 = vld [vmem:[%s3663_s3 + $0x30] sm:$0xff]   ;;  %v299_v2 = vlaneseq  ;;  %s3667_s22 = smov (!%p217_p3, %s2167_s22), 63  ;;  %v3085_v3 = vmov 0   ;;  %v2653_v4 = vld [vmem:[%s3663_s3 + $0x28] sm:$0xff]   ;;  %vm464_vm0 = vcmask 27648  }
   0xc   : > { %2482 = vmatprep.subr.bf16.mxu0 %v2651_v0  ;;  %2626 = vmatprep.subr.bf16.mxu1 %v2651_v0  ;;  %234 = vst [vmem:[#allocation2] sm:$0xf] %v3085_v3  ;;  %235 = vst [vmem:[#allocation2 + $0x4] sm:$0xf] %v3085_v3  ;;  %s2168_s27 = sshll.u32 %s3667_s22, 3  ;;  %v2654_v6 = vld [vmem:[%s3663_s3 + $0x20] sm:$0xff]  }
   0xd   : > { %2483 = vmatpush3.bf16.msra.mxu0 %v2651_v0  ;;  %2634 = vmatpush3.bf16.msra.mxu1 %v2651_v0  ;;  %236 = vst [vmem:[#allocation2 + $0x8] sm:$0xf] %v3085_v3  ;;  %237 = vst [vmem:[#allocation2 + $0xc] sm:$0xf] %v3085_v3  ;;  %v300_v5 = vshrl.u32 %v299_v2, 7  ;;  %s3144_s7 = scalar_lea.vmem %s3660_s0, %s2168_s27  ;;  %v3157_v11 = vld [vmem:[%s3663_s3 + $0x18] sm:$0xff]   ;;  %s3487_s24 = scalar_lea.vmem %s3665_s5, %s2168_s27 }
   0xe   : > { %238 = vst [vmem:[#allocation2 + $0x10] sm:$0xf] %v3085_v3  ;;  %239 = vst [vmem:[#allocation2 + $0x14] sm:$0xf] %v3085_v3  ;;  %2484 = vmatprep.subr.bf16.mxu0 %v2652_v1  ;;  %2627 = vmatprep.subr.bf16.mxu1 %v2652_v1  ;;  %v229_v7 = vld [vmem:[%s3662_s2] sm:$0x1] }
   0xf   : > { %240 = vst [vmem:[#allocation2 + $0x18] sm:$0xf] %v3085_v3  ;;  %241 = vst [vmem:[#allocation2 + $0x1c] sm:$0xf] %v3085_v3  ;;  %v230_v8 = vld [vmem:[%s3661_s1] sm:$0x1] }
  0x10   : > { %242 = vst [vmem:[#allocation2 + $0x20] sm:$0xf] %v3085_v3  ;;  %243 = vst [vmem:[#allocation2 + $0x24] sm:$0xf] %v3085_v3  ;;  %v231_v9 = vsub.f32 1.0, %v230_v8  ;;  %v3152_v10 = vsub.s32 0, %v300_v5 }
  0x11   : > { %244 = vst [vmem:[#allocation2 + $0x28] sm:$0xf] %v3085_v3  ;;  %245 = vst [vmem:[#allocation2 + $0x2c] sm:$0xf] %v3085_v3  ;;  %2485 = vmatpush3.bf16.msra.mxu0 %v2652_v1  ;;  %2635 = vmatpush3.bf16.msra.mxu1 %v2652_v1  ;;  %v266_v13 = vld [vmem:[%s3144_s7] sm:$0xff]  ;;  %v267_v14 = vld [vmem:[%s3144_s7 + $0x8] sm:$0xff] }
  0x12   : > { %246 = vst [vmem:[#allocation2 + $0x30] sm:$0xf] %v3085_v3  ;;  %247 = vst [vmem:[#allocation2 + $0x34] sm:$0xf] %v3085_v3  ;;  %2486 = vmatprep.subr.bf16.mxu0 %v2653_v4  ;;  %2628 = vmatprep.subr.bf16.mxu1 %v2653_v4  ;;  %v232_v12 = vmul.f32 %v231_v9, %v229_v7  ;;  %v268_v15 = vld [vmem:[%s3144_s7 + $0x10] sm:$0xff]  ;;  %v269_v16 = vld [vmem:[%s3144_s7 + $0x18] sm:$0xff] }
  0x13   : > { %248 = vst [vmem:[#allocation2 + $0x38] sm:$0xf] %v3085_v3  ;;  %249 = vst [vmem:[#allocation2 + $0x3c] sm:$0xf] %v3085_v3  ;;  %v270_v18 = vld [vmem:[%s3144_s7 + $0x20] sm:$0xff]  ;;  %v271_v19 = vld [vmem:[%s3144_s7 + $0x28] sm:$0xff] }
  0x14   : > { %250 = vst [vmem:[#allocation2 + $0x40] sm:$0xf] %v3085_v3  ;;  %251 = vst [vmem:[#allocation2 + $0x44] sm:$0xf] %v3085_v3  ;;  %v3164_v17 = vrot.slane %v232_v12, %v3152_v10  ;;  %v272_v20 = vld [vmem:[%s3144_s7 + $0x30] sm:$0xff]  ;;  %v273_v26 = vld [vmem:[%s3144_s7 + $0x38] sm:$0xff] }
  0x15   : > { %252 = vst [vmem:[#allocation2 + $0x48] sm:$0xf] %v3085_v3  ;;  %253 = vst [vmem:[#allocation2 + $0x4c] sm:$0xf] %v3085_v3  ;;  %2487 = vmatpush3.bf16.msra.mxu0 %v2653_v4  ;;  %2636 = vmatpush3.bf16.msra.mxu1 %v2653_v4  ;;  %v3172_v21 = vld [vmem:[%s3663_s3 + $0x10] sm:$0xff]   ;;  %v274_v27 = vld [vmem:[%s3144_s7 + $0x40] sm:$0xff] }
  0x16   : > { %254 = vst [vmem:[#allocation2 + $0x50] sm:$0xf] %v3085_v3  ;;  %255 = vst [vmem:[#allocation2 + $0x54] sm:$0xf] %v3085_v3  ;;  %2488 = vmatprep.subr.bf16.mxu0 %v2654_v6  ;;  %2629 = vmatprep.subr.bf16.mxu1 %v2654_v6  ;;  %v304_v22 = vmul.f32 %v3164_v17, %v266_v13  ;;  %v305_v23 = vmul.f32 %v3164_v17, %v267_v14  ;;  %v275_v28 = vld [vmem:[%s3144_s7 + $0x48] sm:$0xff]  ;;  %v276_v32 = vld [vmem:[%s3144_s7 + $0x50] sm:$0xff] }
  0x17   : > { %256 = vst [vmem:[#allocation2 + $0x58] sm:$0xf] %v3085_v3  ;;  %257 = vst [vmem:[#allocation2 + $0x5c] sm:$0xf] %v3085_v3  ;;  %v306_v24 = vmul.f32 %v3164_v17, %v268_v15  ;;  %v307_v25 = vmul.f32 %v3164_v17, %v269_v16  ;;  %v308_v29 = vmul.f32 %v3164_v17, %v270_v18  ;;  %v277_v33 = vld [vmem:[%s3144_s7 + $0x58] sm:$0xff]  ;;  %v278_v34 = vld [vmem:[%s3144_s7 + $0x60] sm:$0xff] }
  0x18   : > { %258 = vst [vmem:[#allocation2 + $0x60] sm:$0xf] %v3085_v3  ;;  %259 = vst [vmem:[#allocation2 + $0x64] sm:$0xf] %v3085_v3  ;;  %v309_v30 = vmul.f32 %v3164_v17, %v271_v19  ;;  %v310_v31 = vmul.f32 %v3164_v17, %v272_v20  ;;  %v2378_v35 = vpack.c.bf16 %v304_v22, %v304_v22  ;;  %v279_v39 = vld [vmem:[%s3144_s7 + $0x68] sm:$0xff]  ;;  %v280_v40 = vld [vmem:[%s3144_s7 + $0x70] sm:$0xff] }
  0x19   : > { %260 = vst [vmem:[#allocation2 + $0x68] sm:$0xf] %v3085_v3  ;;  %261 = vst [vmem:[#allocation2 + $0x6c] sm:$0xf] %v3085_v3  ;;  %2489 = vmatpush3.bf16.msra.mxu0 %v2654_v6  ;;  %2637 = vmatpush3.bf16.msra.mxu1 %v2654_v6  ;;  %v2379_v36 = vpack.c.bf16 %v305_v23, %v305_v23  ;;  %v2380_v37 = vpack.c.bf16 %v306_v24, %v306_v24  ;;  %v281_v41 = vld [vmem:[%s3144_s7 + $0x78] sm:$0xff]  ;;  %v3195_v42 = vld [vmem:[%s3663_s3 + $0x8] sm:$0xff]  }
  0x1a   : > { %262 = vst [vmem:[#allocation2 + $0x70] sm:$0xf] %v3085_v3  ;;  %263 = vst [vmem:[#allocation2 + $0x74] sm:$0xf] %v3085_v3  ;;  %2490 = vmatprep.subr.bf16.mxu0 %v3157_v11  ;;  %v2381_v38 = vpack.c.bf16 %v307_v25, %v307_v25  ;;  %2630 = vmatprep.subr.bf16.mxu1 %v3157_v11  ;;  %v2382_v43 = vpack.c.bf16 %v308_v29, %v308_v29  ;;  %v282_v47 = vld [vmem:[%s3144_s7 + $0x80] sm:$0xff]  ;;  %v283_v48 = vld [vmem:[%s3144_s7 + $0x88] sm:$0xff] }
  0x1b   : > { %264 = vst [vmem:[#allocation2 + $0x78] sm:$0xf] %v3085_v3  ;;  %265 = vst [vmem:[#allocation2 + $0x7c] sm:$0xf] %v3085_v3  ;;  %v2383_v44 = vpack.c.bf16 %v309_v30, %v309_v30  ;;  %v311_v45 = vmul.f32 %v3164_v17, %v273_v26  ;;  %v2384_v46 = vpack.c.bf16 %v310_v31, %v310_v31  ;;  %v284_v49 = vld [vmem:[%s3144_s7 + $0x90] sm:$0xff]  ;;  %v285_v50 = vld [vmem:[%s3144_s7 + $0x98] sm:$0xff] }
  0x1c   : > { %465 = vst.msk [vmem:[#allocation2] sm:$0xf] %vm464_vm0, %v2378_v35  ;;  %466 = vst.msk [vmem:[#allocation2 + $0x4] sm:$0xf] %vm464_vm0, %v2379_v36  ;;  %v312_v51 = vmul.f32 %v3164_v17, %v274_v27  ;;  %v313_v52 = vmul.f32 %v3164_v17, %v275_v28  ;;  %v314_v53 = vmul.f32 %v3164_v17, %v276_v32  ;;  %v286_v55 = vld [vmem:[%s3144_s7 + $0xa0] sm:$0xff]  ;;  %v287_v63 = vld [vmem:[%s3144_s7 + $0xa8] sm:$0xff] }
  0x1d   : > { %2491 = vmatpush3.bf16.msra.mxu0 %v3157_v11  ;;  %467 = vst.msk [vmem:[#allocation2 + $0x8] sm:$0xf] %vm464_vm0, %v2380_v37  ;;  %468 = vst.msk [vmem:[#allocation2 + $0xc] sm:$0xf] %vm464_vm0, %v2381_v38  ;;  %v315_v54 = vmul.f32 %v3164_v17, %v277_v33  ;;  %v2385_v56 = vpack.c.bf16 %v311_v45, %v311_v45  ;;  %2638 = vmatpush3.bf16.msra.mxu1 %v3157_v11  ;;  %v288_v0 = vld [vmem:[%s3144_s7 + $0xb0] sm:$0xff]  ;;  %v289_v1 = vld [vmem:[%s3144_s7 + $0xb8] sm:$0xff] }
  0x1e   : > { %2492 = vmatprep.subr.bf16.mxu0 %v3172_v21  ;;  %469 = vst.msk [vmem:[#allocation2 + $0x10] sm:$0xf] %vm464_vm0, %v2382_v43  ;;  %470 = vst.msk [vmem:[#allocation2 + $0x14] sm:$0xf] %vm464_vm0, %v2383_v44  ;;  %v316_v57 = vmul.f32 %v3164_v17, %v278_v34  ;;  %v317_v58 = vmul.f32 %v3164_v17, %v279_v39  ;;  %2631 = vmatprep.subr.bf16.mxu1 %v3172_v21  ;;  %v3226_v2 = vld [vmem:[%s3663_s3] sm:$0xff]   ;;  %v291_v8 = vld [vmem:[%s3144_s7 + $0xc8] sm:$0xff] }
  0x1f   : > { %471 = vst.msk [vmem:[#allocation2 + $0x18] sm:$0xf] %vm464_vm0, %v2384_v46  ;;  %v2386_v59 = vpack.c.bf16 %v312_v51, %v312_v51  ;;  %v2387_v60 = vpack.c.bf16 %v313_v52, %v313_v52  ;;  %v2388_v61 = vpack.c.bf16 %v314_v53, %v314_v53  ;;  %v2389_v62 = vpack.c.bf16 %v315_v54, %v315_v54  ;;  %v290_v7 = vld [vmem:[%s3144_s7 + $0xc0] sm:$0xff]  ;;  %v292_v9 = vld [vmem:[%s3144_s7 + $0xd0] sm:$0xff]  ;;  %v293_v11 = vld [vmem:[%s3144_s7 + $0xd8] sm:$0xff] }
  0x20   : > { %472 = vst.msk [vmem:[#allocation2 + $0x1c] sm:$0xf] %vm464_vm0, %v2385_v56  ;;  %v2390_v3 = vpack.c.bf16 %v316_v57, %v316_v57  ;;  %v2391_v4 = vpack.c.bf16 %v317_v58, %v317_v58  ;;  %v318_v5 = vmul.f32 %v3164_v17, %v280_v40  ;;  %v319_v6 = vmul.f32 %v3164_v17, %v281_v41  ;;  %v294_v25 = vld [vmem:[%s3144_s7 + $0xe0] sm:$0xff]  ;;  %v295_v26 = vld [vmem:[%s3144_s7 + $0xe8] sm:$0xff]  ;;  %v296_v27 = vld [vmem:[%s3144_s7 + $0xf0] sm:$0xff] }
  0x21   : > { %2493 = vmatpush3.bf16.msra.mxu0 %v3172_v21  ;;  %473 = vst.msk [vmem:[#allocation2 + $0x20] sm:$0xf] %vm464_vm0, %v2386_v59  ;;  %474 = vst.msk [vmem:[#allocation2 + $0x24] sm:$0xf] %vm464_vm0, %v2387_v60  ;;  %v320_v12 = vmul.f32 %v3164_v17, %v282_v47  ;;  %v321_v13 = vmul.f32 %v3164_v17, %v283_v48  ;;  %v322_v14 = vmul.f32 %v3164_v17, %v284_v49  ;;  %v297_v36 = vld [vmem:[%s3144_s7 + $0xf8] sm:$0xff]  ;;  %vm2073_vm1 = vcmask 31744  }
  0x22   : > { %475 = vst.msk [vmem:[#allocation2 + $0x28] sm:$0xf] %vm464_vm0, %v2388_v61  ;;  %476 = vst.msk [vmem:[#allocation2 + $0x2c] sm:$0xf] %vm464_vm0, %v2389_v62  ;;  %v323_v15 = vmul.f32 %v3164_v17, %v285_v50  ;;  %2494 = vmatprep.subr.bf16.mxu0 %v3195_v42  ;;  %2639 = vmatpush3.bf16.msra.mxu1 %v3172_v21  ;;  %v2392_v16 = vpack.c.bf16 %v318_v5, %v318_v5  ;;  %v2678_v5 = vld [vmem:[%s3663_s3 + $0x60] sm:$0xff]  }
  0x23   : > { %477 = vst.msk [vmem:[#allocation2 + $0x30] sm:$0xf] %vm464_vm0, %v2390_v3  ;;  %478 = vst.msk [vmem:[#allocation2 + $0x34] sm:$0xf] %vm464_vm0, %v2391_v4  ;;  %v2393_v18 = vpack.c.bf16 %v319_v6, %v319_v6  ;;  %v324_v19 = vmul.f32 %v3164_v17, %v286_v55  ;;  %2632 = vmatprep.subr.bf16.mxu1 %v3195_v42  ;;  %v2394_v20 = vpack.c.bf16 %v320_v12, %v320_v12  ;;  %v2659_v28 = vld [vmem:[#allocation2] sm:$0xff]   ;;  %v2676_v3 = vld [vmem:[%s3663_s3 + $0x70] sm:$0xff]  }
  0x24   : > { %v2395_v22 = vpack.c.bf16 %v321_v13, %v321_v13  ;;  %v2396_v23 = vpack.c.bf16 %v322_v14, %v322_v14  ;;  %v2397_v24 = vpack.c.bf16 %v323_v15, %v323_v15  ;;  %479 = vst.msk [vmem:[#allocation2 + $0x38] sm:$0xf] %vm464_vm0, %v2392_v16  ;;  %v325_v21 = vmul.f32 %v3164_v17, %v287_v63  ;;  %v2660_v45 = vld [vmem:[#allocation2 + $0x8] sm:$0xff]   ;;  %v2679_v6 = vld [vmem:[%s3663_s3 + $0x58] sm:$0xff]  }
  0x25   : > { %480 = vst.msk [vmem:[#allocation2 + $0x3c] sm:$0xf] %vm464_vm0, %v2393_v18  ;;  %v2398_v29 = vpack.c.bf16 %v324_v19, %v324_v19  ;;  %v326_v30 = vmul.f32 %v3164_v17, %v288_v0  ;;  %v327_v31 = vmul.f32 %v3164_v17, %v289_v1  ;;  %2495 = vmatpush3.bf16.msra.mxu0 %v3195_v42  ;;  %481 = vst.msk [vmem:[#allocation2 + $0x40] sm:$0xf] %vm464_vm0, %v2394_v20  ;;  %v2661_v49 = vld [vmem:[#allocation2 + $0x10] sm:$0xff]   ;;  %v2677_v4 = vld [vmem:[%s3663_s3 + $0x68] sm:$0xff]  }
  0x26   : > { %482 = vst.msk [vmem:[#allocation2 + $0x44] sm:$0xf] %vm464_vm0, %v2395_v22  ;;  %483 = vst.msk [vmem:[#allocation2 + $0x48] sm:$0xf] %vm464_vm0, %v2396_v23  ;;  %v328_v32 = vmul.f32 %v3164_v17, %v290_v7  ;;  %v329_v33 = vmul.f32 %v3164_v17, %v291_v8  ;;  %v330_v34 = vmul.f32 %v3164_v17, %v292_v9  ;;  %2496 = vmatprep.subr.bf16.mxu0 %v3226_v2  ;;  %v2680_v7 = vld [vmem:[%s3663_s3 + $0x50] sm:$0xff]   ;;  %v2681_v8 = vld [vmem:[%s3663_s3 + $0x48] sm:$0xff]  }
  0x27   : > { %484 = vst.msk [vmem:[#allocation2 + $0x4c] sm:$0xf] %vm464_vm0, %v2397_v24  ;;  %v331_v35 = vmul.f32 %v3164_v17, %v293_v11  ;;  %2498 = vmatprep.mubr.bf16.mxu0 %v2659_v28  ;;  %v2399_v37 = vpack.c.bf16 %v325_v21, %v325_v21  ;;  %485 = vst.msk [vmem:[#allocation2 + $0x50] sm:$0xf] %vm464_vm0, %v2398_v29  ;;  %v2400_v38 = vpack.c.bf16 %v326_v30, %v326_v30  ;;  %v2662_v56 = vld [vmem:[#allocation2 + $0x18] sm:$0xff]   ;;  %v2682_v9 = vld [vmem:[%s3663_s3 + $0x40] sm:$0xff]  }
  0x28   : > { %v2401_v39 = vpack.c.bf16 %v327_v31, %v327_v31  ;;  %2640 = vmatpush3.bf16.msra.mxu1 %v3195_v42  ;;  %v2402_v40 = vpack.c.bf16 %v328_v32, %v328_v32  ;;  %v2403_v41 = vpack.c.bf16 %v329_v33, %v329_v33  ;;  %v2404_v43 = vpack.c.bf16 %v330_v34, %v330_v34  ;;  %v2663_v57 = vld [vmem:[#allocation2 + $0x20] sm:$0xff]  }
  0x29   : > { %v2405_v44 = vpack.c.bf16 %v331_v35, %v331_v35  ;;  %2633 = vmatprep.subr.bf16.mxu1 %v3226_v2  ;;  %486 = vst.msk [vmem:[#allocation2 + $0x54] sm:$0xf] %vm464_vm0, %v2399_v37  ;;  %487 = vst.msk [vmem:[#allocation2 + $0x58] sm:$0xf] %vm464_vm0, %v2400_v38  ;;  %v332_v46 = vmul.f32 %v3164_v17, %v294_v25  ;;  %v333_v47 = vmul.f32 %v3164_v17, %v295_v26  ;;  %v2664_v60 = vld [vmem:[#allocation2 + $0x28] sm:$0xff]  }
  0x2a   : > { %488 = vst.msk [vmem:[#allocation2 + $0x5c] sm:$0xf] %vm464_vm0, %v2401_v39  ;;  %v334_v48 = vmul.f32 %v3164_v17, %v296_v27  ;;  %v335_v42 = vmul.f32 %v3164_v17, %v297_v36  ;;  %2497 = vmatpush3.bf16.msra.mxu0 %v3226_v2  ;;  %489 = vst.msk [vmem:[#allocation2 + $0x60] sm:$0xf] %vm464_vm0, %v2402_v40  ;;  %v2665_v61 = vld [vmem:[#allocation2 + $0x30] sm:$0xff]  }
  0x2b   : > { %490 = vst.msk [vmem:[#allocation2 + $0x64] sm:$0xf] %vm464_vm0, %v2403_v41  ;;  %491 = vst.msk [vmem:[#allocation2 + $0x68] sm:$0xf] %vm464_vm0, %v2404_v43  ;;  %v2406_v50 = vpack.c.bf16 %v332_v46, %v332_v46  ;;  %v2407_v51 = vpack.c.bf16 %v333_v47, %v333_v47  ;;  %v3316_v11 = vld [vmem:[%s3664_s4] ss:$0 sm:$0xff] }
  0x2c   : > { %492 = vst.msk [vmem:[#allocation2 + $0x6c] sm:$0xf] %vm464_vm0, %v2405_v44  ;;  %v2408_v52 = vpack.c.bf16 %v334_v48, %v334_v48  ;;  %v2409_v53 = vpack.c.bf16 %v335_v42, %v335_v42  ;;  %2641 = vmatpush3.bf16.msra.mxu1 %v3226_v2  ;;  %v2666_v0 = vld [vmem:[#allocation2 + $0x38] sm:$0xff]  }
  0x2d   : > { %2499 = vmatmul.mubr.bf16.vlgmr.msra.gmra.mxu0 %v2660_v45  ;;  %v2667_v54 = vld [vmem:[#allocation2 + $0x40] sm:$0xff]   ;;  %493 = vst.msk [vmem:[#allocation2 + $0x70] sm:$0xf] %vm464_vm0, %v2406_v50  ;;  %494 = vst.msk [vmem:[#allocation2 + $0x74] sm:$0xf] %vm464_vm0, %v2407_v51  ;;  %v2675_v2 = vld [vmem:[%s3663_s3 + $0x78] sm:$0xff]  }
  0x2e   : > { %495 = vst.msk [vmem:[#allocation2 + $0x78] sm:$0xf] %vm464_vm0, %v2408_v52  ;;  %496 = vst.msk [vmem:[#allocation2 + $0x7c] sm:$0xf] %vm464_vm0, %v2409_v53  ;;  %2502 = vmatprep.mubr.bf16.mxu0 %v2661_v49  ;;  %v2668_v17 = vld [vmem:[#allocation2 + $0x48] sm:$0xff]   ;;  %2514 = vmatprep.mubr.bf16.mxu1 %v2667_v54 }
  0x2f   : > { %2515 = vmatmul.mubr.bf16.vlgmr.msra.gmra.mxu1 %v2668_v17  ;;  %2530 = vmatprep.subr.bf16.mxu1 %v2675_v2 }
  0x30   : > { %v2669_v55 = vld [vmem:[#allocation2 + $0x50] sm:$0xff]   ;;  %2531 = vmatpush3.bf16.msra.mxu1 %v2675_v2 }
  0x31   : > { %2518 = vmatprep.mubr.bf16.mxu1 %v2669_v55  ;;  %v2670_v58 = vld [vmem:[#allocation2 + $0x58] sm:$0xff]   ;;  %2532 = vmatprep.subr.bf16.mxu1 %v2676_v3 }
  0x32   : > { %v2671_v59 = vld [vmem:[#allocation2 + $0x60] sm:$0xff]  }
  0x33   : > { %v2672_v62 = vld [vmem:[#allocation2 + $0x68] sm:$0xff]  }
  0x34   : > { %v2673_v63 = vld [vmem:[#allocation2 + $0x70] sm:$0xff]   ;;  %2533 = vmatpush3.bf16.msra.mxu1 %v2676_v3 }
  0x35   : > { %2503 = vmatmul.mubr.bf16.gmra.mxu0 %v2662_v56  ;;  %v2674_v1 = vld [vmem:[#allocation2 + $0x78] sm:$0xff]   ;;  %2534 = vmatprep.subr.bf16.mxu1 %v2677_v4 }
  0x36   : > { %2506 = vmatprep.mubr.bf16.mxu0 %v2663_v57 }
  0x37   : > { %2519 = vmatmul.mubr.bf16.gmra.mxu1 %v2670_v58 }
  0x38   : > { %2522 = vmatprep.mubr.bf16.mxu1 %v2671_v59  ;;  %2535 = vmatpush3.bf16.msra.mxu1 %v2677_v4 }
  0x39   : > { %2536 = vmatprep.subr.bf16.mxu1 %v2678_v5 }
  0x3c   : > { %2537 = vmatpush3.bf16.msra.mxu1 %v2678_v5 }
  0x3d   : > { %2507 = vmatmul.mubr.bf16.gmra.mxu0 %v2664_v60  ;;  %2538 = vmatprep.subr.bf16.mxu1 %v2679_v6 }
  0x3e   : > { %2510 = vmatprep.mubr.bf16.mxu0 %v2665_v61 }
  0x3f   : > { %2523 = vmatmul.mubr.bf16.gmra.mxu1 %v2672_v62 }
  0x40   : > { %2526 = vmatprep.mubr.bf16.mxu1 %v2673_v63  ;;  %2539 = vmatpush3.bf16.msra.mxu1 %v2679_v6 }
  0x41   : > { %2540 = vmatprep.subr.bf16.mxu1 %v2680_v7 }
  0x44   : > { %2541 = vmatpush3.bf16.msra.mxu1 %v2680_v7 }
  0x45   : > { %2511 = vmatmul.mubr.bf16.gmra.mxu0 %v2666_v0  ;;  %2542 = vmatprep.subr.bf16.mxu1 %v2681_v8 }
  0x47   : > { %2527 = vmatmul.mubr.bf16.gmra.mxu1 %v2674_v1 }
  0x48   : > { %2543 = vmatpush3.bf16.msra.mxu1 %v2681_v8 }
  0x49   : > { %2544 = vmatprep.subr.bf16.mxu1 %v2682_v9 }
  0x4c   : > { %2545 = vmatpush3.bf16.msra.mxu1 %v2682_v9 }
  0xed   : > { %v2500_v12 = vpop.f32.mrf.mxu0 }
  0xee   : > { %v739_v13 = vadd.f32 %v2500_v12, %v3316_v11 }
  0xef   : > { %v730_v14 = vpop.f32.mrf.mxu0  ;;  %v3320_v18 = vpop.f32.mrf.mxu1 }
  0xf0   : > { %v2230_v15 = vmul.f32 -1.442695, %v739_v13  ;;  %v731_v16 = vadd.f32 %v3316_v11, %v730_v14 }
  0xf1   : > { %v2501_v19 = vpop.f32.mrf.mxu0  ;;  %v794_v23 = vpop.f32.mrf.mxu1 }
  0xf2   : > { %2691 = vpow2.f32 %v2230_v15  ;;  %v2228_v20 = vmul.f32 -1.442695, %v731_v16  ;;  %v742_v22 = vadd.f32 %v2501_v19, %v3316_v11  ;;  %v795_v32 = vadd.f32 %v3316_v11, %v794_v23 }
  0xf3   : > { %v733_v24 = vpop.f32.mrf.mxu0  ;;  %v3324_v27 = vpop.f32.mrf.mxu1 }
  0xf4   : > { %2693 = vpow2.f32 %v2228_v20  ;;  %v2231_v25 = vmul.f32 -1.442695, %v742_v22  ;;  %v734_v26 = vadd.f32 %v3316_v11, %v733_v24  ;;  %v2244_v43 = vmul.f32 -1.442695, %v795_v32 }
  0xf5   : > { %v2504_v28 = vpop.f32.mrf.mxu0  ;;  %v797_v30 = vpop.f32.mrf.mxu1  ;;  %v803_v22 = vadd.f32 %v3320_v18, %v3316_v11 }
  0xf6   : > { %2695 = vpow2.f32 %v2231_v25  ;;  %v2229_v21 = vmul.f32 -1.442695, %v734_v26  ;;  %v755_v29 = vadd.f32 %v2504_v28, %v3316_v11  ;;  %v798_v37 = vadd.f32 %v3316_v11, %v797_v30 }
  0xf7   : > { %v746_v31 = vpop.f32.mrf.mxu0  ;;  %v3329_v35 = vpop.f32.mrf.mxu1  ;;  %v806_v28 = vadd.f32 %v3324_v27, %v3316_v11 }
  0xf8   : > { %2697 = vpow2.f32 %v2229_v21  ;;  %v2234_v33 = vmul.f32 -1.442695, %v755_v29  ;;  %v747_v34 = vadd.f32 %v3316_v11, %v746_v31  ;;  %v2245_v48 = vmul.f32 -1.442695, %v798_v37 }
  0xf9   : > { %v2505_v36 = vpop.f32.mrf.mxu0  ;;  %v3333_v40 = vpop.f32.mrf.mxu1  ;;  %v819_v18 = vadd.f32 %v3329_v35, %v3316_v11 }
  0xfa   : > { %2699 = vpow2.f32 %v2234_v33  ;;  %v2232_v38 = vmul.f32 -1.442695, %v747_v34  ;;  %v758_v39 = vadd.f32 %v2505_v36, %v3316_v11  ;;  %v2246_v36 = vmul.f32 -1.442695, %v803_v22 }
  0xfb   : > { %v749_v41 = vpop.f32.mrf.mxu0  ;;  %v3336_v46 = vpop.f32.mrf.mxu1  ;;  %v811_v37 = vadd.f32 %v3316_v11, %v3333_v40 }
  0xfc   : > { %2701 = vpow2.f32 %v2232_v38  ;;  %v2235_v44 = vmul.f32 -1.442695, %v758_v39  ;;  %v750_v45 = vadd.f32 %v3316_v11, %v749_v41  ;;  %v2247_v39 = vmul.f32 -1.442695, %v806_v28 }
  0xfd   : > { %v2508_v47 = vpop.f32.mrf.mxu0  ;;  %v3339_v50 = vpop.f32.mrf.mxu1  ;;  %v2248_v35 = vmul.f32 -1.442695, %v811_v37 }
  0xfe   : > { %2703 = vpow2.f32 %v2235_v44  ;;  %v2233_v42 = vmul.f32 -1.442695, %v750_v45  ;;  %v771_v49 = vadd.f32 %v2508_v47, %v3316_v11  ;;  %v2250_v45 = vmul.f32 -1.442695, %v819_v18 }
  0xff   : > { %v2692_v51 = vpop.eup %2691  ;;  %v762_v52 = vpop.f32.mrf.mxu0  ;;  %2705 = vpow2.f32 %v2244_v43 }
 0x100   : > { %v955_v53 = vadd.f32 1.0, %v2692_v51  ;;  %2707 = vpow2.f32 %v2233_v42  ;;  %v2238_v54 = vmul.f32 -1.442695, %v771_v49  ;;  %v763_v17 = vadd.f32 %v3316_v11, %v762_v52  ;;  %v3343_v60 = vpop.f32.mrf.mxu1 }
 0x101   : > { %v2694_v55 = vpop.eup %2693  ;;  %v2509_v56 = vpop.f32.mrf.mxu0  ;;  %2709 = vpow2.f32 %v2245_v48  ;;  %v822_v48 = vadd.f32 %v3336_v46, %v3316_v11  ;;  %v814_v46 = vadd.f32 %v3316_v11, %v3339_v50 }
 0x102   : > { %2711 = vrcp.f32 %v955_v53  ;;  %v953_v57 = vadd.f32 1.0, %v2694_v55  ;;  %v2236_v58 = vmul.f32 -1.442695, %v763_v17  ;;  %v774_v59 = vadd.f32 %v2509_v56, %v3316_v11  ;;  %v3347_v7 = vpop.f32.mrf.mxu1 }
 0x103   : > { %v2696_v61 = vpop.eup %2695  ;;  %2713 = vpow2.f32 %v2238_v54  ;;  %v765_v62 = vpop.f32.mrf.mxu0  ;;  %v2251_v55 = vmul.f32 -1.442695, %v822_v48 }
 0x104   : > { %2715 = vrcp.f32 %v953_v57  ;;  %v956_v63 = vadd.f32 1.0, %v2696_v61  ;;  %v2239_v0 = vmul.f32 -1.442695, %v774_v59  ;;  %v766_v1 = vadd.f32 %v3316_v11, %v765_v62  ;;  %v3353_v24 = vpop.f32.mrf.mxu1 }
 0x105   : > { %v2698_v2 = vpop.eup %2697  ;;  %2717 = vpow2.f32 %v2236_v58  ;;  %v2512_v3 = vpop.f32.mrf.mxu0 }
 0x106   : > { %2719 = vrcp.f32 %v956_v63  ;;  %v954_v4 = vadd.f32 1.0, %v2698_v2  ;;  %v2237_v5 = vmul.f32 -1.442695, %v766_v1  ;;  %v787_v6 = vadd.f32 %v2512_v3, %v3316_v11  ;;  %v829_v38 = vpop.f32.mrf.mxu1 }
 0x107   : > { %v2700_v8 = vpop.eup %2699  ;;  %2721 = vpow2.f32 %v2239_v0  ;;  %v778_v9 = vpop.f32.mrf.mxu0  ;;  %v835_v1 = vadd.f32 %v3343_v60, %v3316_v11 }
 0x108   : > { %2723 = vrcp.f32 %v954_v4  ;;  %v959_v12 = vadd.f32 1.0, %v2700_v8  ;;  %v2242_v13 = vmul.f32 -1.442695, %v787_v6  ;;  %v779_v14 = vadd.f32 %v3316_v11, %v778_v9  ;;  %v3364_v42 = vpop.f32.mrf.mxu1 }
 0x109   : > { %v2702_v15 = vpop.eup %2701  ;;  %2725 = vpow2.f32 %v2237_v5  ;;  %v2513_v16 = vpop.f32.mrf.mxu0  ;;  %v827_v4 = vadd.f32 %v3316_v11, %v3347_v7  ;;  %v2249_v6 = vmul.f32 -1.442695, %v814_v46 }
 0x10a   : > { %v957_v19 = vadd.f32 1.0, %v2702_v15  ;;  %v2240_v20 = vmul.f32 -1.442695, %v779_v14  ;;  %v790_v23 = vadd.f32 %v2513_v16, %v3316_v11  ;;  %2727 = vpow2.f32 %v2242_v13  ;;  %v842_v57 = vpop.f32.mrf.mxu1 }
 0x10b   : > { %v2704_v25 = vpop.eup %2703  ;;  %v781_v26 = vpop.f32.mrf.mxu0  ;;  %2729 = vrcp.f32 %v959_v12  ;;  %v2254_v13 = vmul.f32 -1.442695, %v835_v1  ;;  %v830_v14 = vadd.f32 %v3316_v11, %v829_v38  ;;  %v2252_v15 = vmul.f32 -1.442695, %v827_v4 }
 0x10c   : > { %v2706_v21 = vpop.eup %2705  ;;  %v960_v29 = vadd.f32 1.0, %v2704_v25  ;;  %v782_v30 = vadd.f32 %v3316_v11, %v781_v26  ;;  %2731 = vpow2.f32 %v2240_v20  ;;  %v2243_v32 = vmul.f32 -1.442695, %v790_v23  ;;  %v2529_v5 = vpop.f32.mrf.mxu1 }
 0x10d   : > { %v2708_v31 = vpop.eup %2707  ;;  %2733 = vrcp.f32 %v957_v19  ;;  %v969_v62 = vadd.f32 1.0, %v2706_v21  ;;  %v838_v16 = vadd.f32 %v3353_v24, %v3316_v11  ;;  %v843_v23 = vadd.f32 %v3316_v11, %v842_v57 }
 0x10e   : > { %v2710_v33 = vpop.eup %2709  ;;  %v958_v34 = vadd.f32 1.0, %v2708_v31  ;;  %2735 = vrcp.f32 %v960_v29  ;;  %v2241_v43 = vmul.f32 -1.442695, %v782_v30  ;;  %v845_v7 = vpop.f32.mrf.mxu1  ;;  %v2253_v21 = vmul.f32 -1.442695, %v830_v14 }
 0x10f   : > { %v2712_v27 = vpop.eup %2711  ;;  %v970_v0 = vadd.f32 1.0, %v2710_v33  ;;  %v846_v29 = vadd.f32 %v3316_v11, %v845_v7  ;;  %v2255_v24 = vmul.f32 -1.442695, %v838_v16  ;;  %v2256_v18 = vmul.f32 -1.442695, %v843_v23 }
 0x110   : > { %v2714_v41 = vpop.eup %2713  ;;  %2737 = vrcp.f32 %v958_v34 }
 0x111   : > { %v2716_v44 = vpop.eup %2715  ;;  %2739 = vpow2.f32 %v2243_v32  ;;  %v963_v17 = vadd.f32 1.0, %v2714_v41  ;;  %v2257_v37 = vmul.f32 -1.442695, %v846_v29 }
 0x112   : > { %v2718_v47 = vpop.eup %2717  ;;  %2741 = vpow2.f32 %v2246_v36  ;;  %v851_v36 = vadd.f32 %v3364_v42, %v3316_v11 }
 0x113   : > { %v2720_v49 = vpop.eup %2719  ;;  %v961_v40 = vadd.f32 1.0, %v2718_v47  ;;  %2743 = vpow2.f32 %v2247_v39  ;;  %v854_v39 = vadd.f32 %v2529_v5, %v3316_v11 }
 0x114   : > { %v2722_v51 = vpop.eup %2721  ;;  %2745 = vpow2.f32 %v2241_v43  ;;  %v1050_v59 = vpack.c.bf16 %v2720_v49, %v2712_v27  ;;  %v2258_v49 = vmul.f32 -1.442695, %v851_v36  ;;  %v2683_v36 = vld [vmem:[%s3663_s3 + $0xb8] sm:$0xff]  }
 0x115   : > { %v2724_v52 = vpop.eup %2723  ;;  %v964_v53 = vadd.f32 1.0, %v2722_v51  ;;  %2747 = vpow2.f32 %v2250_v45  ;;  %v2259_v42 = vmul.f32 -1.442695, %v854_v39  ;;  %2578 = vmatprep.subr.bf16.mxu0 %v2683_v36  ;;  %v2687_v39 = vld [vmem:[%s3663_s3 + $0x98] sm:$0xff]  }
 0x116   : > { %v2726_v54 = vpop.eup %2725  ;;  %2749 = vpow2.f32 %v2248_v35  ;;  %v1049_v56 = vpack.c.bf16 %v2724_v52, %v2716_v44  ;;  %2579 = vmatpush3.bf16.msra.mxu0 %v2683_v36 }
 0x117   : > { %2751 = vrcp.f32 %v961_v40  ;;  %v962_v58 = vadd.f32 1.0, %v2726_v54  ;;  %v2728_v61 = vpop.eup %2727 }
 0x118   : > { %2753 = vrcp.f32 %v964_v53  ;;  %2546 = vmatprep.mubr.bf16.mxu1 %v1049_v56  ;;  %v2730_v63 = vpop.eup %2729  ;;  %v967_v3 = vadd.f32 1.0, %v2728_v61 }
 0x119   : > { %2755 = vrcp.f32 %v962_v58  ;;  %2547 = vmatmul.mubr.bf16.vlgmr.msra.gmra.mxu1 %v1050_v59  ;;  %v2732_v2 = vpop.eup %2731 }
 0x11a   : > { %2757 = vrcp.f32 %v963_v17  ;;  %v2734_v50 = vpop.eup %2733  ;;  %v965_v9 = vadd.f32 1.0, %v2732_v2 }
 0x11b   : > { %2759 = vpow2.f32 %v2251_v55  ;;  %v2736_v8 = vpop.eup %2735 }
 0x11c   : > { %2761 = vrcp.f32 %v969_v62  ;;  %v1052_v25 = vpack.c.bf16 %v2736_v8, %v2730_v63 }
 0x11d   : > { %v2738_v12 = vpop.eup %2737  ;;  %2763 = vrcp.f32 %v970_v0 }
 0x11e   : > { %v2740_v60 = vpop.eup %2739  ;;  %2765 = vrcp.f32 %v967_v3  ;;  %v1051_v19 = vpack.c.bf16 %v2738_v12, %v2734_v50 }
 0x11f   : > { %v2742_v20 = vpop.eup %2741  ;;  %v968_v22 = vadd.f32 1.0, %v2740_v60  ;;  %2767 = vpow2.f32 %v2249_v6 }
 0x120   : > { %v2744_v26 = vpop.eup %2743  ;;  %2769 = vrcp.f32 %v965_v9  ;;  %2550 = vmatprep.mubr.bf16.mxu1 %v1051_v19  ;;  %v971_v27 = vadd.f32 1.0, %v2742_v20 }
 0x121   : > { %v2746_v28 = vpop.eup %2745  ;;  %2771 = vpow2.f32 %v2254_v13  ;;  %2551 = vmatmul.mubr.bf16.gmra.mxu1 %v1052_v25  ;;  %v972_v43 = vadd.f32 1.0, %v2744_v26 }
 0x122   : > { %v2748_v30 = vpop.eup %2747  ;;  %v966_v31 = vadd.f32 1.0, %v2746_v28  ;;  %2773 = vpow2.f32 %v2252_v15 }
 0x123   : > { %v2750_v32 = vpop.eup %2749  ;;  %2775 = vrcp.f32 %v968_v22  ;;  %v975_v53 = vadd.f32 1.0, %v2748_v30 }
 0x124   : > { %v2752_v33 = vpop.eup %2751  ;;  %2777 = vrcp.f32 %v966_v31  ;;  %v973_v47 = vadd.f32 1.0, %v2750_v32 }
 0x125   : > { %v2754_v34 = vpop.eup %2753  ;;  %2779 = vpow2.f32 %v2253_v21 }
 0x126   : > { %v2756_v38 = vpop.eup %2755  ;;  %2781 = vpow2.f32 %v2255_v24 }
 0x127   : > { %v2758_v41 = vpop.eup %2757  ;;  %2783 = vpow2.f32 %v2256_v18  ;;  %v1053_v44 = vpack.c.bf16 %v2756_v38, %v2752_v33  ;;  %v2685_v38 = vld [vmem:[%s3663_s3 + $0xa8] sm:$0xff]  }
 0x128   : > { %v2760_v45 = vpop.eup %2759  ;;  %v1054_v35 = vpack.c.bf16 %v2754_v34, %v2758_v41  ;;  %2785 = vpow2.f32 %v2257_v37  ;;  %v2684_v37 = vld [vmem:[%s3663_s3 + $0xb0] sm:$0xff]  }
 0x129   : > { %v2762_v48 = vpop.eup %2761  ;;  %2554 = vmatprep.mubr.bf16.mxu1 %v1053_v44  ;;  %2787 = vrcp.f32 %v971_v27  ;;  %v976_v55 = vadd.f32 1.0, %v2760_v45  ;;  %2580 = vmatprep.subr.bf16.mxu0 %v2684_v37  ;;  %v2686_v27 = vld [vmem:[%s3663_s3 + $0xa0] sm:$0xff]   ;;  %v2688_v41 = vld [vmem:[%s3663_s3 + $0x90] sm:$0xff]  }
 0x12a   : > { %v2764_v40 = vpop.eup %2763  ;;  %2555 = vmatmul.mubr.bf16.gmra.mxu1 %v1054_v35  ;;  %2789 = vrcp.f32 %v972_v43  ;;  %2581 = vmatpush3.bf16.msra.mxu0 %v2684_v37  ;;  %v2689_v43 = vld [vmem:[%s3663_s3 + $0x88] sm:$0xff]   ;;  %v2690_v44 = vld [vmem:[%s3663_s3 + $0x80] sm:$0xff]  }
 0x12b   : > { %v2766_v51 = vpop.eup %2765  ;;  %2791 = vrcp.f32 %v973_v47  ;;  %v1057_v62 = vpack.c.bf16 %v2764_v40, %v2762_v48  ;;  %2582 = vmatprep.subr.bf16.mxu0 %v2685_v38  ;;  %v3407_v45 = vld [vmem:[%s3664_s4 + $0x1] ss:$0 sm:$0xff] }
 0x12c   : > { %v2768_v52 = vpop.eup %2767  ;;  %2793 = vpow2.f32 %v2258_v49 }
 0x12d   : > { %v2770_v11 = vpop.eup %2769  ;;  %v974_v54 = vadd.f32 1.0, %v2768_v52  ;;  %2795 = vpow2.f32 %v2259_v42 }
 0x12e   : > { %v2772_v17 = vpop.eup %2771  ;;  %2583 = vmatpush3.bf16.msra.mxu0 %v2685_v38 }
 0x12f   : > { %v2774_v56 = vpop.eup %2773  ;;  %2797 = vrcp.f32 %v974_v54  ;;  %v979_v3 = vadd.f32 1.0, %v2772_v17  ;;  %2584 = vmatprep.subr.bf16.mxu0 %v2686_v27 }
 0x130   : > { %v2776_v57 = vpop.eup %2775  ;;  %v977_v58 = vadd.f32 1.0, %v2774_v56  ;;  %2799 = vrcp.f32 %v975_v53 }
 0x131   : > { %v2778_v46 = vpop.eup %2777  ;;  %2801 = vrcp.f32 %v976_v55  ;;  %v1056_v1 = vpack.c.bf16 %v2776_v57, %v2766_v51 }
 0x132   : > { %v2780_v59 = vpop.eup %2779  ;;  %v1055_v61 = vpack.c.bf16 %v2778_v46, %v2770_v11  ;;  %2803 = vrcp.f32 %v977_v58  ;;  %2585 = vmatpush3.bf16.msra.mxu0 %v2686_v27 }
 0x133   : > { %v2782_v63 = vpop.eup %2781  ;;  %v978_v0 = vadd.f32 1.0, %v2780_v59  ;;  %2586 = vmatprep.subr.bf16.mxu0 %v2687_v39 }
 0x134   : > { %v2784_v2 = vpop.eup %2783  ;;  %2558 = vmatprep.mubr.bf16.mxu1 %v1055_v61  ;;  %v980_v6 = vadd.f32 1.0, %v2782_v63 }
 0x135   : > { %2805 = vrcp.f32 %v978_v0  ;;  %v981_v4 = vadd.f32 1.0, %v2784_v2  ;;  %2559 = vmatmul.mubr.bf16.gmra.mxu1 %v1056_v1  ;;  %v2786_v5 = vpop.eup %2785 }
 0x136   : > { %2562 = vmatprep.mubr.bf16.mxu1 %v1057_v62  ;;  %v2788_v50 = vpop.eup %2787  ;;  %v982_v8 = vadd.f32 1.0, %v2786_v5  ;;  %2807 = vrcp.f32 %v979_v3  ;;  %2587 = vmatpush3.bf16.msra.mxu0 %v2687_v39 }
 0x137   : > { %v2790_v9 = vpop.eup %2789  ;;  %2809 = vrcp.f32 %v981_v4  ;;  %2588 = vmatprep.subr.bf16.mxu0 %v2688_v41 }
 0x138   : > { %v2792_v12 = vpop.eup %2791  ;;  %2811 = vrcp.f32 %v982_v8  ;;  %v1058_v60 = vpack.c.bf16 %v2790_v9, %v2788_v50 }
 0x139   : > { %v2794_v13 = vpop.eup %2793  ;;  %2813 = vrcp.f32 %v980_v6 }
 0x13a   : > { %v2796_v14 = vpop.eup %2795  ;;  %v983_v7 = vadd.f32 1.0, %v2794_v13  ;;  %2589 = vmatpush3.bf16.msra.mxu0 %v2688_v41 }
 0x13b   : > { %v984_v22 = vadd.f32 1.0, %v2796_v14  ;;  %2590 = vmatprep.subr.bf16.mxu0 %v2689_v43 }
 0x13c   : > { %v2798_v15 = vpop.eup %2797  ;;  %2815 = vrcp.f32 %v983_v7 }
 0x13d   : > { %2563 = vmatmul.mubr.bf16.gmra.mxu1 %v1058_v60  ;;  %v1059_v16 = vpack.c.bf16 %v2798_v15, %v2792_v12  ;;  %v2800_v19 = vpop.eup %2799  ;;  %2817 = vrcp.f32 %v984_v22 }
 0x13e   : > { %v2802_v20 = vpop.eup %2801  ;;  %2591 = vmatpush3.bf16.msra.mxu0 %v2689_v43 }
 0x13f   : > { %2566 = vmatprep.mubr.bf16.mxu1 %v1059_v16  ;;  %v2804_v23 = vpop.eup %2803  ;;  %v1060_v26 = vpack.c.bf16 %v2802_v20, %v2800_v19  ;;  %2592 = vmatprep.subr.bf16.mxu0 %v2690_v44 }
 0x142   : > { %v2806_v25 = vpop.eup %2805  ;;  %2593 = vmatpush3.bf16.msra.mxu0 %v2690_v44 }
 0x143   : > { %v1061_v28 = vpack.c.bf16 %v2806_v25, %v2804_v23  ;;  %v2808_v21 = vpop.eup %2807 }
 0x144   : > { %v2810_v29 = vpop.eup %2809 }
 0x145   : > { %2567 = vmatmul.mubr.bf16.gmra.mxu1 %v1060_v26  ;;  %v2812_v30 = vpop.eup %2811 }
 0x146   : > { %2570 = vmatprep.mubr.bf16.mxu1 %v1061_v28  ;;  %v2814_v31 = vpop.eup %2813  ;;  %v1063_v24 = vpack.c.bf16 %v2812_v30, %v2810_v29 }
 0x147   : > { %v1062_v32 = vpack.c.bf16 %v2814_v31, %v2808_v21 }
 0x149   : > { %v2816_v18 = vpop.eup %2815 }
 0x14a   : > { %v2818_v33 = vpop.eup %2817 }
 0x14b   : > { %v1064_v34 = vpack.c.bf16 %v2818_v33, %v2816_v18 }
 0x14d   : > { %2571 = vmatmul.mubr.bf16.gmra.mxu1 %v1062_v32 }
 0x14e   : > { %2574 = vmatprep.mubr.bf16.mxu1 %v1063_v24 }
 0x155   : > { %2575 = vmatmul.mubr.bf16.gmra.mxu1 %v1064_v34 }
 0x1d9   : > { %v2548_v47 = vpop.f32.mrf.mxu1 }
 0x1da   : > { %v1181_v35 = vadd.f32 %v2548_v47, %v3407_v45 }
 0x1db   : > { %v1172_v48 = vpop.f32.mrf.mxu1 }
 0x1dc   : > { %v2288_v49 = vmul.f32 -1.442695, %v1181_v35  ;;  %v1173_v40 = vadd.f32 %v3407_v45, %v1172_v48 }
 0x1dd   : > { %v2549_v42 = vpop.f32.mrf.mxu1 }
 0x1de   : > { %2819 = vpow2.f32 %v2288_v49  ;;  %v2286_v51 = vmul.f32 -1.442695, %v1173_v40  ;;  %v1184_v52 = vadd.f32 %v2549_v42, %v3407_v45 }
 0x1df   : > { %v1175_v11 = vpop.f32.mrf.mxu1 }
 0x1e0   : > { %2821 = vpow2.f32 %v2286_v51  ;;  %v2289_v53 = vmul.f32 -1.442695, %v1184_v52  ;;  %v1176_v54 = vadd.f32 %v3407_v45, %v1175_v11 }
 0x1e1   : > { %v2552_v17 = vpop.f32.mrf.mxu1 }
 0x1e2   : > { %2823 = vpow2.f32 %v2289_v53  ;;  %v2287_v55 = vmul.f32 -1.442695, %v1176_v54  ;;  %v1197_v56 = vadd.f32 %v2552_v17, %v3407_v45 }
 0x1e3   : > { %v1188_v57 = vpop.f32.mrf.mxu1 }
 0x1e4   : > { %2825 = vpow2.f32 %v2287_v55  ;;  %v2292_v58 = vmul.f32 -1.442695, %v1197_v56  ;;  %v1189_v46 = vadd.f32 %v3407_v45, %v1188_v57 }
 0x1e5   : > { %v2553_v59 = vpop.f32.mrf.mxu1 }
 0x1e6   : > { %2827 = vpow2.f32 %v2292_v58  ;;  %v2290_v61 = vmul.f32 -1.442695, %v1189_v46  ;;  %v1200_v62 = vadd.f32 %v2553_v59, %v3407_v45 }
 0x1e7   : > { %v1191_v63 = vpop.f32.mrf.mxu1 }
 0x1e8   : > { %2829 = vpow2.f32 %v2290_v61  ;;  %v2293_v0 = vmul.f32 -1.442695, %v1200_v62  ;;  %v1192_v1 = vadd.f32 %v3407_v45, %v1191_v63 }
 0x1ea   : > { %2831 = vpow2.f32 %v2293_v0  ;;  %v2291_v2 = vmul.f32 -1.442695, %v1192_v1  ;;  %v2556_v3 = vpop.f32.mrf.mxu1 }
 0x1eb   : > { %v2820_v4 = vpop.eup %2819  ;;  %v1213_v5 = vadd.f32 %v2556_v3, %v3407_v45 }
 0x1ec   : > { %v1397_v50 = vadd.f32 1.0, %v2820_v4  ;;  %2833 = vpow2.f32 %v2291_v2  ;;  %v1204_v6 = vpop.f32.mrf.mxu1 }
 0x1ed   : > { %v2822_v8 = vpop.eup %2821  ;;  %v2296_v9 = vmul.f32 -1.442695, %v1213_v5  ;;  %v1205_v12 = vadd.f32 %v3407_v45, %v1204_v6 }
 0x1ee   : > { %2835 = vrcp.f32 %v1397_v50  ;;  %v1395_v13 = vadd.f32 1.0, %v2822_v8  ;;  %v2557_v14 = vpop.f32.mrf.mxu1 }
 0x1ef   : > { %v2824_v60 = vpop.eup %2823  ;;  %2837 = vpow2.f32 %v2296_v9  ;;  %v2294_v15 = vmul.f32 -1.442695, %v1205_v12  ;;  %v1216_v16 = vadd.f32 %v2557_v14, %v3407_v45 }
 0x1f0   : > { %2839 = vrcp.f32 %v1395_v13  ;;  %v1398_v19 = vadd.f32 1.0, %v2824_v60  ;;  %v1207_v7 = vpop.f32.mrf.mxu1 }
 0x1f1   : > { %v2826_v20 = vpop.eup %2825  ;;  %2841 = vpow2.f32 %v2294_v15  ;;  %v2297_v22 = vmul.f32 -1.442695, %v1216_v16  ;;  %v1208_v23 = vadd.f32 %v3407_v45, %v1207_v7 }
 0x1f2   : > { %2843 = vrcp.f32 %v1398_v19  ;;  %v1396_v25 = vadd.f32 1.0, %v2826_v20 }
 0x1f3   : > { %v2828_v26 = vpop.eup %2827  ;;  %2845 = vpow2.f32 %v2297_v22  ;;  %v2295_v28 = vmul.f32 -1.442695, %v1208_v23 }
 0x1f4   : > { %2847 = vrcp.f32 %v1396_v25  ;;  %v1401_v21 = vadd.f32 1.0, %v2828_v26 }
 0x1f5   : > { %v2830_v29 = vpop.eup %2829  ;;  %2849 = vpow2.f32 %v2295_v28  ;;  %v2560_v30 = vpop.f32.mrf.mxu1 }
 0x1f6   : > { %v1399_v31 = vadd.f32 1.0, %v2830_v29  ;;  %v1229_v24 = vadd.f32 %v2560_v30, %v3407_v45  ;;  %2851 = vrcp.f32 %v1401_v21 }
 0x1f7   : > { %v2832_v32 = vpop.eup %2831  ;;  %v1220_v18 = vpop.f32.mrf.mxu1 }
 0x1f8   : > { %v1402_v33 = vadd.f32 1.0, %v2832_v32  ;;  %v2300_v34 = vmul.f32 -1.442695, %v1229_v24  ;;  %v1221_v36 = vadd.f32 %v3407_v45, %v1220_v18  ;;  %2853 = vrcp.f32 %v1399_v31 }
 0x1f9   : > { %v2834_v37 = vpop.eup %2833  ;;  %v2561_v38 = vpop.f32.mrf.mxu1 }
 0x1fa   : > { %2855 = vrcp.f32 %v1402_v33  ;;  %v1400_v27 = vadd.f32 1.0, %v2834_v37  ;;  %v2298_v39 = vmul.f32 -1.442695, %v1221_v36  ;;  %v1232_v41 = vadd.f32 %v2561_v38, %v3407_v45 }
 0x1fb   : > { %v2836_v43 = vpop.eup %2835  ;;  %2857 = vpow2.f32 %v2300_v34  ;;  %v1223_v44 = vpop.f32.mrf.mxu1 }
 0x1fc   : > { %v2838_v47 = vpop.eup %2837  ;;  %2859 = vrcp.f32 %v1400_v27  ;;  %v2301_v35 = vmul.f32 -1.442695, %v1232_v41  ;;  %v1224_v48 = vadd.f32 %v3407_v45, %v1223_v44 }
 0x1fd   : > { %v2840_v49 = vpop.eup %2839  ;;  %v1405_v40 = vadd.f32 1.0, %v2838_v47  ;;  %2861 = vpow2.f32 %v2298_v39  ;;  %v2564_v42 = vpop.f32.mrf.mxu1 }
 0x1fe   : > { %v2842_v51 = vpop.eup %2841  ;;  %2863 = vpow2.f32 %v2301_v35  ;;  %v2299_v52 = vmul.f32 -1.442695, %v1224_v48  ;;  %v1245_v11 = vadd.f32 %v2564_v42, %v3407_v45 }
 0x1ff   : > { %v2844_v53 = vpop.eup %2843  ;;  %2865 = vrcp.f32 %v1405_v40  ;;  %v1403_v54 = vadd.f32 1.0, %v2842_v51  ;;  %v1236_v17 = vpop.f32.mrf.mxu1 }
 0x200   : > { %v2846_v55 = vpop.eup %2845  ;;  %2867 = vpow2.f32 %v2299_v52  ;;  %v2304_v56 = vmul.f32 -1.442695, %v1245_v11  ;;  %v1237_v57 = vadd.f32 %v3407_v45, %v1236_v17  ;;  %v1492_v3 = vpack.c.bf16 %v2844_v53, %v2836_v43 }
 0x201   : > { %v2848_v58 = vpop.eup %2847  ;;  %2869 = vrcp.f32 %v1403_v54  ;;  %v1406_v46 = vadd.f32 1.0, %v2846_v55  ;;  %v2565_v59 = vpop.f32.mrf.mxu1 }
 0x202   : > { %v2850_v61 = vpop.eup %2849  ;;  %2871 = vpow2.f32 %v2304_v56  ;;  %v2302_v62 = vmul.f32 -1.442695, %v1237_v57  ;;  %v1248_v63 = vadd.f32 %v2565_v59, %v3407_v45  ;;  %v1491_v0 = vpack.c.bf16 %v2848_v58, %v2840_v49 }
 0x203   : > { %2873 = vrcp.f32 %v1406_v46  ;;  %v1404_v1 = vadd.f32 1.0, %v2850_v61  ;;  %v1239_v2 = vpop.f32.mrf.mxu1  ;;  %v2852_v50 = vpop.eup %2851 }
 0x204   : > { %2875 = vpow2.f32 %v2302_v62  ;;  %v2305_v4 = vmul.f32 -1.442695, %v1248_v63  ;;  %v1240_v5 = vadd.f32 %v3407_v45, %v1239_v2  ;;  %2594 = vmatprep.mubr.bf16.mxu0 %v1491_v0 }
 0x205   : > { %2877 = vrcp.f32 %v1404_v1  ;;  %v2568_v6 = vpop.f32.mrf.mxu1  ;;  %2595 = vmatmul.mubr.bf16.vlgmr.msra.gmra.mxu0 %v1492_v3  ;;  %v2854_v8 = vpop.eup %2853 }
 0x206   : > { %2879 = vpow2.f32 %v2305_v4  ;;  %v2303_v9 = vmul.f32 -1.442695, %v1240_v5  ;;  %v1261_v12 = vadd.f32 %v2568_v6, %v3407_v45 }
 0x207   : > { %v2856_v13 = vpop.eup %2855  ;;  %v1252_v14 = vpop.f32.mrf.mxu1 }
 0x208   : > { %v2858_v60 = vpop.eup %2857  ;;  %2881 = vpow2.f32 %v2303_v9  ;;  %v2308_v15 = vmul.f32 -1.442695, %v1261_v12  ;;  %v1253_v16 = vadd.f32 %v3407_v45, %v1252_v14  ;;  %v1494_v30 = vpack.c.bf16 %v2856_v13, %v2852_v50 }
 0x209   : > { %v2860_v19 = vpop.eup %2859  ;;  %v1409_v7 = vadd.f32 1.0, %v2858_v60  ;;  %v2569_v20 = vpop.f32.mrf.mxu1 }
 0x20a   : > { %v2862_v22 = vpop.eup %2861  ;;  %2883 = vpow2.f32 %v2308_v15  ;;  %v2306_v23 = vmul.f32 -1.442695, %v1253_v16  ;;  %v1264_v25 = vadd.f32 %v2569_v20, %v3407_v45  ;;  %v1493_v26 = vpack.c.bf16 %v2860_v19, %v2854_v8 }
 0x20b   : > { %v2864_v28 = vpop.eup %2863  ;;  %2885 = vrcp.f32 %v1409_v7  ;;  %v1407_v21 = vadd.f32 1.0, %v2862_v22  ;;  %v1255_v29 = vpop.f32.mrf.mxu1 }
 0x20c   : > { %v2866_v31 = vpop.eup %2865  ;;  %v1410_v24 = vadd.f32 1.0, %v2864_v28  ;;  %2887 = vpow2.f32 %v2306_v23  ;;  %v2309_v32 = vmul.f32 -1.442695, %v1264_v25  ;;  %v1256_v18 = vadd.f32 %v3407_v45, %v1255_v29  ;;  %2598 = vmatprep.mubr.bf16.mxu0 %v1493_v26 }
 0x20d   : > { %v2868_v33 = vpop.eup %2867  ;;  %2889 = vrcp.f32 %v1407_v21  ;;  %v2572_v34 = vpop.f32.mrf.mxu1  ;;  %2599 = vmatmul.mubr.bf16.gmra.mxu0 %v1494_v30 }
 0x20e   : > { %v2870_v36 = vpop.eup %2869  ;;  %2891 = vrcp.f32 %v1410_v24  ;;  %v1408_v37 = vadd.f32 1.0, %v2868_v33  ;;  %v2307_v38 = vmul.f32 -1.442695, %v1256_v18  ;;  %v1277_v27 = vadd.f32 %v2572_v34, %v3407_v45 }
 0x20f   : > { %v2872_v39 = vpop.eup %2871  ;;  %2893 = vpow2.f32 %v2309_v32  ;;  %v1268_v41 = vpop.f32.mrf.mxu1 }
 0x210   : > { %v2874_v43 = vpop.eup %2873  ;;  %2895 = vrcp.f32 %v1408_v37  ;;  %v1413_v44 = vadd.f32 1.0, %v2872_v39  ;;  %v2312_v47 = vmul.f32 -1.442695, %v1277_v27  ;;  %v1269_v35 = vadd.f32 %v3407_v45, %v1268_v41 }
 0x211   : > { %v2876_v48 = vpop.eup %2875  ;;  %2897 = vpow2.f32 %v2307_v38  ;;  %v2573_v49 = vpop.f32.mrf.mxu1  ;;  %v1496_v17 = vpack.c.bf16 %v2874_v43, %v2866_v31 }
 0x212   : > { %v2878_v40 = vpop.eup %2877  ;;  %2899 = vrcp.f32 %v1413_v44  ;;  %v1411_v42 = vadd.f32 1.0, %v2876_v48  ;;  %v2310_v51 = vmul.f32 -1.442695, %v1269_v35  ;;  %v1280_v52 = vadd.f32 %v2573_v49, %v3407_v45 }
 0x213   : > { %v2880_v11 = vpop.eup %2879  ;;  %2901 = vpow2.f32 %v2312_v47  ;;  %v1271_v53 = vpop.f32.mrf.mxu1  ;;  %v1495_v54 = vpack.c.bf16 %v2878_v40, %v2870_v36 }
 0x214   : > { %2903 = vrcp.f32 %v1411_v42  ;;  %v1414_v55 = vadd.f32 1.0, %v2880_v11  ;;  %v2313_v56 = vmul.f32 -1.442695, %v1280_v52  ;;  %v1272_v57 = vadd.f32 %v3407_v45, %v1271_v53 }
 0x215   : > { %v2882_v58 = vpop.eup %2881  ;;  %2905 = vpow2.f32 %v2310_v51  ;;  %v2576_v46 = vpop.f32.mrf.mxu1  ;;  %2602 = vmatprep.mubr.bf16.mxu0 %v1495_v54 }
 0x216   : > { %2907 = vrcp.f32 %v1414_v55  ;;  %v1412_v59 = vadd.f32 1.0, %v2882_v58  ;;  %v2311_v61 = vmul.f32 -1.442695, %v1272_v57  ;;  %v1293_v62 = vadd.f32 %v2576_v46, %v3407_v45  ;;  %2603 = vmatmul.mubr.bf16.gmra.mxu0 %v1496_v17 }
 0x217   : > { %v2884_v63 = vpop.eup %2883  ;;  %2909 = vpow2.f32 %v2313_v56  ;;  %v1284_v0 = vpop.f32.mrf.mxu1 }
 0x218   : > { %v2886_v1 = vpop.eup %2885  ;;  %2911 = vrcp.f32 %v1412_v59  ;;  %v2316_v2 = vmul.f32 -1.442695, %v1293_v62  ;;  %v1285_v3 = vadd.f32 %v3407_v45, %v1284_v0  ;;  %v1417_v20 = vadd.f32 1.0, %v2884_v63  ;;  %v3444_v0 = vld [vmem:[%s3664_s4 + $0x2] ss:$0 sm:$0xff] }
 0x219   : > { %v2888_v4 = vpop.eup %2887  ;;  %2913 = vpow2.f32 %v2311_v61  ;;  %v2577_v5 = vpop.f32.mrf.mxu1 }
 0x21a   : > { %v2890_v50 = vpop.eup %2889  ;;  %v1415_v6 = vadd.f32 1.0, %v2888_v4  ;;  %v2314_v8 = vmul.f32 -1.442695, %v1285_v3  ;;  %v1296_v9 = vadd.f32 %v2577_v5, %v3407_v45  ;;  %2915 = vpow2.f32 %v2316_v2 }
 0x21b   : > { %v2892_v12 = vpop.eup %2891  ;;  %v1287_v13 = vpop.f32.mrf.mxu1 }
 0x21c   : > { %v2894_v14 = vpop.eup %2893  ;;  %2917 = vrcp.f32 %v1415_v6  ;;  %v2317_v60 = vmul.f32 -1.442695, %v1296_v9  ;;  %v1288_v15 = vadd.f32 %v3407_v45, %v1287_v13  ;;  %v1498_v28 = vpack.c.bf16 %v2892_v12, %v2886_v1 }
 0x21d   : > { %v2896_v16 = vpop.eup %2895  ;;  %v1418_v19 = vadd.f32 1.0, %v2894_v14  ;;  %2919 = vpow2.f32 %v2314_v8 }
 0x21e   : > { %v2898_v7 = vpop.eup %2897  ;;  %2921 = vpow2.f32 %v2317_v60  ;;  %v2315_v22 = vmul.f32 -1.442695, %v1288_v15  ;;  %v1497_v23 = vpack.c.bf16 %v2896_v16, %v2890_v50 }
 0x21f   : > { %v2900_v25 = vpop.eup %2899  ;;  %2923 = vrcp.f32 %v1418_v19  ;;  %v1416_v26 = vadd.f32 1.0, %v2898_v7 }
 0x220   : > { %v2902_v21 = vpop.eup %2901  ;;  %2925 = vpow2.f32 %v2315_v22  ;;  %2606 = vmatprep.mubr.bf16.mxu0 %v1497_v23 }
 0x221   : > { %v2904_v29 = vpop.eup %2903  ;;  %2927 = vrcp.f32 %v1416_v26  ;;  %2607 = vmatmul.mubr.bf16.gmra.mxu0 %v1498_v28  ;;  %v1421_v34 = vadd.f32 1.0, %v2902_v21 }
 0x222   : > { %v2906_v30 = vpop.eup %2905  ;;  %2929 = vrcp.f32 %v1417_v20 }
 0x223   : > { %v2908_v45 = vpop.eup %2907  ;;  %v1419_v31 = vadd.f32 1.0, %v2906_v30 }
 0x224   : > { %v2910_v24 = vpop.eup %2909  ;;  %v1500_v38 = vpack.c.bf16 %v2908_v45, %v2900_v25 }
 0x225   : > { %v2912_v32 = vpop.eup %2911  ;;  %v1422_v18 = vadd.f32 1.0, %v2910_v24  ;;  %2931 = vrcp.f32 %v1419_v31 }
 0x226   : > { %v2914_v33 = vpop.eup %2913  ;;  %v1499_v36 = vpack.c.bf16 %v2912_v32, %v2904_v29 }
 0x227   : > { %v1420_v37 = vadd.f32 1.0, %v2914_v33  ;;  %v2916_v27 = vpop.eup %2915  ;;  %2933 = vrcp.f32 %v1422_v18 }
 0x228   : > { %2610 = vmatprep.mubr.bf16.mxu0 %v1499_v36  ;;  %v1425_v40 = vadd.f32 1.0, %v2916_v27  ;;  %v3076_v27 = vld [vmem:[%s3661_s1] sm:$0x1] }
 0x229   : > { %v2918_v39 = vpop.eup %2917  ;;  %2935 = vrcp.f32 %v1420_v37  ;;  %2611 = vmatmul.mubr.bf16.gmra.mxu0 %v1500_v38  ;;  %v3075_v38 = vld [vmem:[%s3662_s2] sm:$0x1] }
 0x22a   : > { %v2920_v41 = vpop.eup %2919  ;;  %2937 = vrcp.f32 %v1421_v34 }
 0x22b   : > { %v2922_v43 = vpop.eup %2921  ;;  %v1423_v44 = vadd.f32 1.0, %v2920_v41 }
 0x22c   : > { %v2924_v47 = vpop.eup %2923  ;;  %v1426_v35 = vadd.f32 1.0, %v2922_v43 }
 0x22d   : > { %v2926_v48 = vpop.eup %2925  ;;  %2939 = vrcp.f32 %v1423_v44 }
 0x22e   : > { %v2928_v49 = vpop.eup %2927  ;;  %v1424_v42 = vadd.f32 1.0, %v2926_v48  ;;  %2941 = vrcp.f32 %v1426_v35 }
 0x22f   : > { %v2930_v51 = vpop.eup %2929  ;;  %v1501_v52 = vpack.c.bf16 %v2928_v49, %v2918_v39  ;;  %v233_v39 = vmul.f32 %v3076_v27, %v3075_v38 }
 0x230   : > { %2943 = vrcp.f32 %v1424_v42  ;;  %v1502_v11 = vpack.c.bf16 %v2924_v47, %v2930_v51 }
 0x231   : > { %2614 = vmatprep.mubr.bf16.mxu0 %v1501_v52  ;;  %2945 = vrcp.f32 %v1425_v40  ;;  %v3465_v51 = vrot.slane %v233_v39, %v3152_v10 }
 0x232   : > { %2615 = vmatmul.mubr.bf16.gmra.mxu0 %v1502_v11  ;;  %v2932_v53 = vpop.eup %2931  ;;  %v1935_v11 = vld [vmem:[%s3144_s7 + $0x10] sm:$0xff] }
 0x234   : > { %v2934_v54 = vpop.eup %2933 }
 0x236   : > { %v2936_v17 = vpop.eup %2935 }
 0x237   : > { %v2938_v55 = vpop.eup %2937  ;;  %v1503_v56 = vpack.c.bf16 %v2936_v17, %v2932_v53 }
 0x238   : > { %v1504_v57 = vpack.c.bf16 %v2934_v54, %v2938_v55  ;;  %v1933_v55 = vld [vmem:[%s3144_s7] sm:$0xff] }
 0x239   : > { %2618 = vmatprep.mubr.bf16.mxu0 %v1503_v56 }
 0x23a   : > { %2619 = vmatmul.mubr.bf16.gmra.mxu0 %v1504_v57  ;;  %v2940_v58 = vpop.eup %2939 }
 0x23b   : > { %v2942_v46 = vpop.eup %2941 }
 0x23d   : > { %v2944_v59 = vpop.eup %2943 }
 0x23e   : > { %v1505_v61 = vpack.c.bf16 %v2944_v59, %v2940_v58  ;;  %v2946_v62 = vpop.eup %2945 }
 0x23f   : > { %v1506_v63 = vpack.c.bf16 %v2942_v46, %v2946_v62  ;;  %v1973_v46 = vmul.f32 %v3465_v51, %v1935_v11 }
 0x240   : > { %2622 = vmatprep.mubr.bf16.mxu0 %v1505_v61  ;;  %v1936_v61 = vld [vmem:[%s3144_s7 + $0x18] sm:$0xff] }
 0x242   : > { %2623 = vmatmul.mubr.bf16.gmra.mxu0 %v1506_v63 }
 0x2c5   : > { %v2596_v1 = vpop.f32.mrf.mxu0 }
 0x2c6   : > { %v1623_v2 = vadd.f32 %v2596_v1, %v3444_v0 }
 0x2c7   : > { %v1614_v3 = vpop.f32.mrf.mxu0 }
 0x2c8   : > { %v2346_v4 = vmul.f32 -1.442695, %v1623_v2  ;;  %v1615_v5 = vadd.f32 %v3444_v0, %v1614_v3  ;;  %v3474_v3 = vrot.slane %v3075_v38, %v3152_v10  ;;  %v1939_v10 = vld [vmem:[%s3144_s7 + $0x30] sm:$0xff] }
 0x2c9   : > { %v2597_v50 = vpop.f32.mrf.mxu0 }
 0x2ca   : > { %2947 = vpow2.f32 %v2346_v4  ;;  %v2344_v6 = vmul.f32 -1.442695, %v1615_v5  ;;  %v1626_v8 = vadd.f32 %v2597_v50, %v3444_v0  ;;  %v1971_v4 = vmul.f32 %v3465_v51, %v1933_v55  ;;  %v1934_v50 = vld [vmem:[%s3144_s7 + $0x8] sm:$0xff] }
 0x2cb   : > { %v1617_v9 = vpop.f32.mrf.mxu0 }
 0x2cc   : > { %2949 = vpow2.f32 %v2344_v6  ;;  %v2347_v12 = vmul.f32 -1.442695, %v1626_v8  ;;  %v1618_v13 = vadd.f32 %v3444_v0, %v1617_v9 }
 0x2cd   : > { %v2600_v14 = vpop.f32.mrf.mxu0 }
 0x2ce   : > { %2951 = vpow2.f32 %v2347_v12  ;;  %v2345_v60 = vmul.f32 -1.442695, %v1618_v13  ;;  %v1639_v15 = vadd.f32 %v2600_v14, %v3444_v0  ;;  %v1974_v13 = vmul.f32 %v3465_v51, %v1936_v61 }
 0x2cf   : > { %v1630_v16 = vpop.f32.mrf.mxu0 }
 0x2d0   : > { %2953 = vpow2.f32 %v2345_v60  ;;  %v2350_v19 = vmul.f32 -1.442695, %v1639_v15  ;;  %v1631_v7 = vadd.f32 %v3444_v0, %v1630_v16 }
 0x2d1   : > { %v2601_v20 = vpop.f32.mrf.mxu0 }
 0x2d2   : > { %2955 = vpow2.f32 %v2350_v19  ;;  %v2348_v22 = vmul.f32 -1.442695, %v1631_v7  ;;  %v1642_v23 = vadd.f32 %v2601_v20, %v3444_v0  ;;  %v1972_v20 = vmul.f32 %v3465_v51, %v1934_v50 }
 0x2d3   : > { %v1633_v25 = vpop.f32.mrf.mxu0 }
 0x2d4   : > { %2957 = vpow2.f32 %v2348_v22  ;;  %v2351_v26 = vmul.f32 -1.442695, %v1642_v23  ;;  %v1634_v28 = vadd.f32 %v3444_v0, %v1633_v25 }
 0x2d6   : > { %2959 = vpow2.f32 %v2351_v26  ;;  %v2349_v21 = vmul.f32 -1.442695, %v1634_v28  ;;  %v2604_v29 = vpop.f32.mrf.mxu0 }
 0x2d7   : > { %v2948_v30 = vpop.eup %2947  ;;  %v1655_v45 = vadd.f32 %v2604_v29, %v3444_v0 }
 0x2d8   : > { %v1839_v31 = vadd.f32 1.0, %v2948_v30  ;;  %2961 = vpow2.f32 %v2349_v21  ;;  %v1646_v24 = vpop.f32.mrf.mxu0  ;;  %v1937_v21 = vld [vmem:[%s3144_s7 + $0x20] sm:$0xff] }
 0x2d9   : > { %v2950_v32 = vpop.eup %2949  ;;  %v2354_v18 = vmul.f32 -1.442695, %v1655_v45  ;;  %v1647_v33 = vadd.f32 %v3444_v0, %v1646_v24  ;;  %v1977_v45 = vmul.f32 %v3465_v51, %v1939_v10  ;;  %v1975_v27 = vmul.f32 %v3465_v51, %v1937_v21 }
 0x2da   : > { %2963 = vrcp.f32 %v1839_v31  ;;  %v1837_v34 = vadd.f32 1.0, %v2950_v32  ;;  %v2605_v36 = vpop.f32.mrf.mxu0 }
 0x2db   : > { %v2952_v37 = vpop.eup %2951  ;;  %2965 = vpow2.f32 %v2354_v18  ;;  %v2352_v41 = vmul.f32 -1.442695, %v1647_v33  ;;  %v1658_v43 = vadd.f32 %v2605_v36, %v3444_v0  ;;  %v1940_v36 = vld [vmem:[%s3144_s7 + $0x38] sm:$0xff] }
 0x2dc   : > { %2967 = vrcp.f32 %v1837_v34  ;;  %v1840_v44 = vadd.f32 1.0, %v2952_v37  ;;  %v1649_v47 = vpop.f32.mrf.mxu0 }
 0x2dd   : > { %v2954_v35 = vpop.eup %2953  ;;  %2969 = vpow2.f32 %v2352_v41  ;;  %v2355_v48 = vmul.f32 -1.442695, %v1658_v43  ;;  %v1650_v49 = vadd.f32 %v3444_v0, %v1649_v47 }
 0x2de   : > { %2971 = vrcp.f32 %v1840_v44  ;;  %v1838_v40 = vadd.f32 1.0, %v2954_v35 }
 0x2df   : > { %v2956_v42 = vpop.eup %2955  ;;  %2973 = vpow2.f32 %v2355_v48  ;;  %v2353_v52 = vmul.f32 -1.442695, %v1650_v49 }
 0x2e0   : > { %2975 = vrcp.f32 %v1838_v40  ;;  %v1843_v53 = vadd.f32 1.0, %v2956_v42  ;;  %v1978_v42 = vmul.f32 %v3465_v51, %v1940_v36 }
 0x2e1   : > { %v2958_v54 = vpop.eup %2957  ;;  %2977 = vpow2.f32 %v2353_v52  ;;  %v2608_v17 = vpop.f32.mrf.mxu0  ;;  %v1938_v52 = vld [vmem:[%s3144_s7 + $0x28] sm:$0xff] }
 0x2e2   : > { %2979 = vrcp.f32 %v1843_v53  ;;  %v1841_v56 = vadd.f32 1.0, %v2958_v54  ;;  %v1671_v57 = vadd.f32 %v2608_v17, %v3444_v0  ;;  %v1976_v61 = vmul.f32 %v3465_v51, %v1938_v52  ;;  %v1947_v52 = vld [vmem:[%s3144_s7 + $0x70] sm:$0xff] }
 0x2e3   : > { %v2960_v58 = vpop.eup %2959  ;;  %v1662_v59 = vpop.f32.mrf.mxu0 }
 0x2e4   : > { %2981 = vrcp.f32 %v1841_v56  ;;  %v1844_v62 = vadd.f32 1.0, %v2960_v58  ;;  %v2358_v63 = vmul.f32 -1.442695, %v1671_v57  ;;  %v1663_v1 = vadd.f32 %v3444_v0, %v1662_v59  ;;  %v1943_v57 = vld [vmem:[%s3144_s7 + $0x50] sm:$0xff] }
 0x2e5   : > { %v2962_v2 = vpop.eup %2961  ;;  %v2609_v5 = vpop.f32.mrf.mxu0 }
 0x2e6   : > { %2983 = vrcp.f32 %v1844_v62  ;;  %v1842_v6 = vadd.f32 1.0, %v2962_v2  ;;  %v2356_v8 = vmul.f32 -1.442695, %v1663_v1  ;;  %v1674_v9 = vadd.f32 %v2609_v5, %v3444_v0  ;;  %v1941_v1 = vld [vmem:[%s3144_s7 + $0x40] sm:$0xff] }
 0x2e7   : > { %v2964_v12 = vpop.eup %2963  ;;  %2985 = vpow2.f32 %v2358_v63  ;;  %v1665_v14 = vpop.f32.mrf.mxu0 }
 0x2e8   : > { %v2966_v60 = vpop.eup %2965  ;;  %v2005_v15 = vadd.f32 %v2964_v12, %v1973_v46  ;;  %2987 = vrcp.f32 %v1842_v6  ;;  %v2359_v16 = vmul.f32 -1.442695, %v1674_v9  ;;  %v1666_v19 = vadd.f32 %v3444_v0, %v1665_v14 }
 0x2e9   : > { %v2968_v7 = vpop.eup %2967  ;;  %v1847_v22 = vadd.f32 1.0, %v2966_v60  ;;  %2989 = vpow2.f32 %v2356_v8  ;;  %v2612_v23 = vpop.f32.mrf.mxu0  ;;  %v1981_v8 = vmul.f32 %v3465_v51, %v1943_v57 }
 0x2ea   : > { %v2970_v25 = vpop.eup %2969  ;;  %v2043_v26 = vmul.f32 %v3474_v3, %v2005_v15  ;;  %v2003_v28 = vadd.f32 %v2968_v7, %v1971_v4  ;;  %2991 = vpow2.f32 %v2359_v16  ;;  %v2357_v29 = vmul.f32 -1.442695, %v1666_v19 }
 0x2eb   : > { %v2972_v30 = vpop.eup %2971  ;;  %2993 = vrcp.f32 %v1847_v22  ;;  %v1845_v31 = vadd.f32 1.0, %v2970_v25  ;;  %v1687_v24 = vadd.f32 %v2612_v23, %v3444_v0  ;;  %v1678_v32 = vpop.f32.mrf.mxu0  ;;  %v1979_v7 = vmul.f32 %v3465_v51, %v1941_v1  ;;  %v1942_v23 = vld [vmem:[%s3144_s7 + $0x48] sm:$0xff] }
 0x2ec   : > { %v2974_v18 = vpop.eup %2973  ;;  %2076 = vst.msk [vmem:[%s3487_s24 + $0x10] sm:$0xff] %vm2073_vm1, %v2043_v26  ;;  %v2041_v33 = vmul.f32 %v3474_v3, %v2003_v28  ;;  %v2006_v34 = vadd.f32 %v2972_v30, %v1974_v13  ;;  %2995 = vpow2.f32 %v2357_v29  ;;  %v1679_v37 = vadd.f32 %v3444_v0, %v1678_v32  ;;  %v1944_v13 = vld [vmem:[%s3144_s7 + $0x58] sm:$0xff] }
 0x2ed   : > { %v2976_v38 = vpop.eup %2975  ;;  %2997 = vrcp.f32 %v1845_v31  ;;  %v1848_v39 = vadd.f32 1.0, %v2974_v18  ;;  %v2362_v41 = vmul.f32 -1.442695, %v1687_v24  ;;  %v2613_v43 = vpop.f32.mrf.mxu0  ;;  %v1982_v30 = vmul.f32 %v3465_v51, %v1944_v13 }
 0x2ee   : > { %v2978_v44 = vpop.eup %2977  ;;  %2074 = vst.msk [vmem:[%s3487_s24] sm:$0xff] %vm2073_vm1, %v2041_v33  ;;  %v2044_v47 = vmul.f32 %v3474_v3, %v2006_v34  ;;  %v2004_v35 = vadd.f32 %v2976_v38, %v1972_v20  ;;  %v2360_v48 = vmul.f32 -1.442695, %v1679_v37  ;;  %v1690_v49 = vadd.f32 %v2613_v43, %v3444_v0 }
 0x2ef   : > { %v2980_v40 = vpop.eup %2979  ;;  %2999 = vrcp.f32 %v1848_v39  ;;  %v1846_v11 = vadd.f32 1.0, %v2978_v44  ;;  %v1681_v53 = vpop.f32.mrf.mxu0  ;;  %v1980_v36 = vmul.f32 %v3465_v51, %v1942_v23  ;;  %v1985_v1 = vmul.f32 %v3465_v51, %v1947_v52  ;;  %v1950_v52 = vld [vmem:[%s3144_s7 + $0x88] sm:$0xff] }
 0x2f0   : > { %2077 = vst.msk [vmem:[%s3487_s24 + $0x18] sm:$0xff] %vm2073_vm1, %v2044_v47  ;;  %v2042_v54 = vmul.f32 %v3474_v3, %v2004_v35  ;;  %v2009_v17 = vadd.f32 %v2980_v40, %v1977_v45  ;;  %3001 = vpow2.f32 %v2362_v41  ;;  %v2363_v55 = vmul.f32 -1.442695, %v1690_v49 }
 0x2f1   : > { %v2982_v56 = vpop.eup %2981  ;;  %3003 = vrcp.f32 %v1846_v11  ;;  %v1682_v58 = vadd.f32 %v3444_v0, %v1681_v53 }
 0x2f2   : > { %2075 = vst.msk [vmem:[%s3487_s24 + $0x8] sm:$0xff] %vm2073_vm1, %v2042_v54  ;;  %v2047_v46 = vmul.f32 %v3474_v3, %v2009_v17  ;;  %v2007_v59 = vadd.f32 %v2982_v56, %v1975_v27  ;;  %3005 = vpow2.f32 %v2360_v48  ;;  %v2616_v62 = vpop.f32.mrf.mxu0 }
 0x2f3   : > { %v2984_v63 = vpop.eup %2983  ;;  %3007 = vpow2.f32 %v2363_v55  ;;  %v2361_v2 = vmul.f32 -1.442695, %v1682_v58  ;;  %v1703_v4 = vadd.f32 %v2616_v62, %v3444_v0 }
 0x2f4   : > { %v2986_v5 = vpop.eup %2985  ;;  %2080 = vst.msk [vmem:[%s3487_s24 + $0x30] sm:$0xff] %vm2073_vm1, %v2047_v46  ;;  %v2045_v50 = vmul.f32 %v3474_v3, %v2007_v59  ;;  %v2010_v6 = vadd.f32 %v2984_v63, %v1978_v42  ;;  %v1694_v9 = vpop.f32.mrf.mxu0  ;;  %v1945_v46 = vld [vmem:[%s3144_s7 + $0x60] sm:$0xff] }
 0x2f5   : > { %v2988_v12 = vpop.eup %2987  ;;  %v1851_v14 = vadd.f32 1.0, %v2986_v5  ;;  %3009 = vpow2.f32 %v2361_v2  ;;  %v2366_v60 = vmul.f32 -1.442695, %v1703_v4  ;;  %v1695_v15 = vadd.f32 %v3444_v0, %v1694_v9  ;;  %v1948_v2 = vld [vmem:[%s3144_s7 + $0x78] sm:$0xff] }
 0x2f6   : > { %v2990_v10 = vpop.eup %2989  ;;  %2078 = vst.msk [vmem:[%s3487_s24 + $0x20] sm:$0xff] %vm2073_vm1, %v2045_v50  ;;  %v2048_v16 = vmul.f32 %v3474_v3, %v2010_v6  ;;  %v2008_v19 = vadd.f32 %v2988_v12, %v1976_v61  ;;  %v2617_v20 = vpop.f32.mrf.mxu0  ;;  %v1983_v9 = vmul.f32 %v3465_v51, %v1945_v46  ;;  %v1946_v12 = vld [vmem:[%s3144_s7 + $0x68] sm:$0xff] }
 0x2f7   : > { %v2992_v22 = vpop.eup %2991  ;;  %3011 = vrcp.f32 %v1851_v14  ;;  %v1849_v25 = vadd.f32 1.0, %v2990_v10  ;;  %v2364_v26 = vmul.f32 -1.442695, %v1695_v15  ;;  %v1706_v28 = vadd.f32 %v2617_v20, %v3444_v0  ;;  %v1951_v20 = vld [vmem:[%s3144_s7 + $0x90] sm:$0xff] }
 0x2f8   : > { %v2994_v21 = vpop.eup %2993  ;;  %2081 = vst.msk [vmem:[%s3487_s24 + $0x38] sm:$0xff] %vm2073_vm1, %v2048_v16  ;;  %v2046_v29 = vmul.f32 %v3474_v3, %v2008_v19  ;;  %v1852_v45 = vadd.f32 1.0, %v2992_v22  ;;  %3013 = vpow2.f32 %v2366_v60  ;;  %v1697_v31 = vpop.f32.mrf.mxu0  ;;  %v1986_v15 = vmul.f32 %v3465_v51, %v1948_v2 }
 0x2f9   : > { %v2996_v24 = vpop.eup %2995  ;;  %v2013_v32 = vadd.f32 %v2994_v21, %v1981_v8  ;;  %3015 = vrcp.f32 %v1849_v25  ;;  %v2367_v18 = vmul.f32 -1.442695, %v1706_v28  ;;  %v1698_v33 = vadd.f32 %v3444_v0, %v1697_v31 }
 0x2fa   : > { %v2998_v34 = vpop.eup %2997  ;;  %2079 = vst.msk [vmem:[%s3487_s24 + $0x28] sm:$0xff] %vm2073_vm1, %v2046_v29  ;;  %3017 = vrcp.f32 %v1852_v45  ;;  %v1850_v37 = vadd.f32 1.0, %v2996_v24  ;;  %v2620_v38 = vpop.f32.mrf.mxu0 }
 0x2fb   : > { %v2051_v27 = vmul.f32 %v3474_v3, %v2013_v32  ;;  %v2011_v39 = vadd.f32 %v2998_v34, %v1979_v7  ;;  %3019 = vpow2.f32 %v2364_v26  ;;  %v2365_v41 = vmul.f32 -1.442695, %v1698_v33 }
 0x2fc   : > { %v3000_v43 = vpop.eup %2999  ;;  %3021 = vrcp.f32 %v1850_v37  ;;  %v1719_v44 = vadd.f32 %v2620_v38, %v3444_v0  ;;  %v1710_v47 = vpop.f32.mrf.mxu0  ;;  %v1984_v26 = vmul.f32 %v3465_v51, %v1946_v12  ;;  %v1949_v38 = vld [vmem:[%s3144_s7 + $0x80] sm:$0xff] }
 0x2fd   : > { %v3002_v35 = vpop.eup %3001  ;;  %2084 = vst.msk [vmem:[%s3487_s24 + $0x50] sm:$0xff] %vm2073_vm1, %v2051_v27  ;;  %v2049_v48 = vmul.f32 %v3474_v3, %v2011_v39  ;;  %v2014_v49 = vadd.f32 %v3000_v43, %v1982_v30  ;;  %3023 = vpow2.f32 %v2367_v18  ;;  %v1711_v40 = vadd.f32 %v3444_v0, %v1710_v47  ;;  %v1952_v47 = vld [vmem:[%s3144_s7 + $0x98] sm:$0xff] }
 0x2fe   : > { %v3004_v42 = vpop.eup %3003  ;;  %v1855_v11 = vadd.f32 1.0, %v3002_v35  ;;  %3025 = vpow2.f32 %v2365_v41  ;;  %v2370_v53 = vmul.f32 -1.442695, %v1719_v44  ;;  %v2621_v54 = vpop.f32.mrf.mxu0  ;;  %v1989_v18 = vmul.f32 %v3465_v51, %v1951_v20 }
 0x2ff   : > { %v3006_v17 = vpop.eup %3005  ;;  %2082 = vst.msk [vmem:[%s3487_s24 + $0x40] sm:$0xff] %vm2073_vm1, %v2049_v48  ;;  %v2052_v55 = vmul.f32 %v3474_v3, %v2014_v49  ;;  %v2012_v56 = vadd.f32 %v3004_v42, %v1980_v36  ;;  %v1722_v57 = vadd.f32 %v2621_v54, %v3444_v0  ;;  %v2368_v61 = vmul.f32 -1.442695, %v1711_v40 }
 0x300   : > { %v3008_v58 = vpop.eup %3007  ;;  %3027 = vrcp.f32 %v1855_v11  ;;  %v1853_v59 = vadd.f32 1.0, %v3006_v17  ;;  %v1713_v62 = vpop.f32.mrf.mxu0  ;;  %v1990_v54 = vmul.f32 %v3465_v51, %v1952_v47 }
 0x301   : > { %2085 = vst.msk [vmem:[%s3487_s24 + $0x58] sm:$0xff] %vm2073_vm1, %v2052_v55  ;;  %v2050_v63 = vmul.f32 %v3474_v3, %v2012_v56  ;;  %v1856_v4 = vadd.f32 1.0, %v3008_v58  ;;  %3029 = vpow2.f32 %v2370_v53  ;;  %v2371_v50 = vmul.f32 -1.442695, %v1722_v57  ;;  %v1955_v58 = vld [vmem:[%s3144_s7 + $0xb0] sm:$0xff] }
 0x302   : > { %v3010_v5 = vpop.eup %3009  ;;  %3031 = vrcp.f32 %v1853_v59  ;;  %v1714_v6 = vadd.f32 %v3444_v0, %v1713_v62  ;;  %v2624_v8 = vpop.f32.mrf.mxu0  ;;  %v1988_v57 = vmul.f32 %v3465_v51, %v1950_v52 }
 0x303   : > { %2083 = vst.msk [vmem:[%s3487_s24 + $0x48] sm:$0xff] %vm2073_vm1, %v2050_v63  ;;  %3033 = vrcp.f32 %v1856_v4  ;;  %v1854_v13 = vadd.f32 1.0, %v3010_v5  ;;  %v1735_v14 = vadd.f32 %v2624_v8, %v3444_v0  ;;  %v1993_v5 = vmul.f32 %v3465_v51, %v1955_v58 }
 0x304   : > { %v3012_v60 = vpop.eup %3011  ;;  %3035 = vpow2.f32 %v2368_v61  ;;  %v2369_v10 = vmul.f32 -1.442695, %v1714_v6  ;;  %v1726_v16 = vpop.f32.mrf.mxu0 }
 0x305   : > { %v3014_v19 = vpop.eup %3013  ;;  %v2017_v7 = vadd.f32 %v3012_v60, %v1985_v1  ;;  %3037 = vrcp.f32 %v1854_v13  ;;  %v2374_v22 = vmul.f32 -1.442695, %v1735_v14  ;;  %v1727_v23 = vadd.f32 %v3444_v0, %v1726_v16  ;;  %v1956_v14 = vld [vmem:[%s3144_s7 + $0xb8] sm:$0xff] }
 0x306   : > { %v3016_v25 = vpop.eup %3015  ;;  %v1859_v28 = vadd.f32 1.0, %v3014_v19  ;;  %3039 = vpow2.f32 %v2371_v50  ;;  %v2625_v21 = vpop.f32.mrf.mxu0  ;;  %v1953_v50 = vld [vmem:[%s3144_s7 + $0xa0] sm:$0xff]  ;;  %v1954_v19 = vld [vmem:[%s3144_s7 + $0xa8] sm:$0xff] }
 0x307   : > { %v3018_v29 = vpop.eup %3017  ;;  %v2055_v30 = vmul.f32 %v3474_v3, %v2017_v7  ;;  %v2015_v45 = vadd.f32 %v3016_v25, %v1983_v9  ;;  %3041 = vpow2.f32 %v2369_v10  ;;  %v2372_v31 = vmul.f32 -1.442695, %v1727_v23 }
 0x308   : > { %v3020_v24 = vpop.eup %3019  ;;  %v2018_v32 = vadd.f32 %v3018_v29, %v1986_v15  ;;  %3043 = vrcp.f32 %v1859_v28  ;;  %v1738_v33 = vadd.f32 %v2625_v21, %v3444_v0  ;;  %v1729_v34 = vpop.f32.mrf.mxu0  ;;  %v1991_v16 = vmul.f32 %v3465_v51, %v1953_v50 }
 0x309   : > { %v3022_v36 = vpop.eup %3021  ;;  %2088 = vst.msk [vmem:[%s3487_s24 + $0x70] sm:$0xff] %vm2073_vm1, %v2055_v30  ;;  %v2053_v37 = vmul.f32 %v3474_v3, %v2015_v45  ;;  %v1857_v27 = vadd.f32 1.0, %v3020_v24  ;;  %3045 = vpow2.f32 %v2374_v22  ;;  %v1730_v39 = vadd.f32 %v3444_v0, %v1729_v34  ;;  %v1959_v30 = vld [vmem:[%s3144_s7 + $0xd0] sm:$0xff] }
 0x30a   : > { %v3024_v41 = vpop.eup %3023  ;;  %v2056_v43 = vmul.f32 %v3474_v3, %v2018_v32  ;;  %v2016_v44 = vadd.f32 %v3022_v36, %v1984_v26  ;;  %3047 = vpow2.f32 %v2372_v31  ;;  %v2375_v35 = vmul.f32 -1.442695, %v1738_v33 }
 0x30b   : > { %v3026_v48 = vpop.eup %3025  ;;  %2086 = vst.msk [vmem:[%s3487_s24 + $0x60] sm:$0xff] %vm2073_vm1, %v2053_v37  ;;  %3049 = vrcp.f32 %v1857_v27  ;;  %v1860_v49 = vadd.f32 1.0, %v3024_v41  ;;  %v2373_v40 = vmul.f32 -1.442695, %v1730_v39  ;;  %v1987_v0 = vmul.f32 %v3465_v51, %v1949_v38  ;;  %v1957_v38 = vld [vmem:[%s3144_s7 + $0xc0] sm:$0xff] }
 0x30c   : > { %2089 = vst.msk [vmem:[%s3487_s24 + $0x78] sm:$0xff] %vm2073_vm1, %v2056_v43  ;;  %v2054_v42 = vmul.f32 %v3474_v3, %v2016_v44  ;;  %v1858_v11 = vadd.f32 1.0, %v3026_v48  ;;  %3051 = vpow2.f32 %v2375_v35  ;;  %v1994_v25 = vmul.f32 %v3465_v51, %v1956_v14  ;;  %v1960_v43 = vld [vmem:[%s3144_s7 + $0xd8] sm:$0xff] }
 0x30d   : > { %v3028_v53 = vpop.eup %3027  ;;  %3053 = vrcp.f32 %v1860_v49  ;;  %v1992_v29 = vmul.f32 %v3465_v51, %v1954_v19  ;;  %v1997_v37 = vmul.f32 %v3465_v51, %v1959_v30  ;;  %v1995_v48 = vmul.f32 %v3465_v51, %v1957_v38  ;;  %v1958_v49 = vld [vmem:[%s3144_s7 + $0xc8] sm:$0xff] }
 0x30e   : > { %v3030_v17 = vpop.eup %3029  ;;  %2087 = vst.msk [vmem:[%s3487_s24 + $0x68] sm:$0xff] %vm2073_vm1, %v2054_v42  ;;  %v2021_v55 = vadd.f32 %v3028_v53, %v1989_v18  ;;  %3055 = vrcp.f32 %v1858_v11  ;;  %v1998_v42 = vmul.f32 %v3465_v51, %v1960_v43  ;;  %v1996_v53 = vmul.f32 %v3465_v51, %v1958_v49 }
 0x30f   : > { %v3032_v56 = vpop.eup %3031  ;;  %v1863_v46 = vadd.f32 1.0, %v3030_v17  ;;  %3057 = vpow2.f32 %v2373_v40 }
 0x310   : > { %v3034_v59 = vpop.eup %3033  ;;  %v2059_v61 = vmul.f32 %v3474_v3, %v2021_v55  ;;  %v2019_v62 = vadd.f32 %v3032_v56, %v1987_v0  ;;  %v1963_v0 = vld [vmem:[%s3144_s7 + $0xf0] sm:$0xff] }
 0x311   : > { %v3036_v63 = vpop.eup %3035  ;;  %v2022_v1 = vadd.f32 %v3034_v59, %v1990_v54  ;;  %3059 = vrcp.f32 %v1863_v46  ;;  %v1961_v54 = vld [vmem:[%s3144_s7 + $0xe0] sm:$0xff]  ;;  %v2001_v56 = vmul.f32 %v3465_v51, %v1963_v0 }
 0x312   : > { %v3038_v2 = vpop.eup %3037  ;;  %2092 = vst.msk [vmem:[%s3487_s24 + $0x90] sm:$0xff] %vm2073_vm1, %v2059_v61  ;;  %v2057_v4 = vmul.f32 %v3474_v3, %v2019_v62  ;;  %v1861_v6 = vadd.f32 1.0, %v3036_v63  ;;  %v1999_v61 = vmul.f32 %v3465_v51, %v1961_v54 }
 0x313   : > { %v3040_v8 = vpop.eup %3039  ;;  %v2060_v9 = vmul.f32 %v3474_v3, %v2022_v1  ;;  %v2020_v12 = vadd.f32 %v3038_v2, %v1988_v57  ;;  %v1964_v57 = vld [vmem:[%s3144_s7 + $0xf8] sm:$0xff] }
 0x314   : > { %v3042_v13 = vpop.eup %3041  ;;  %2090 = vst.msk [vmem:[%s3487_s24 + $0x80] sm:$0xff] %vm2073_vm1, %v2057_v4  ;;  %3061 = vrcp.f32 %v1861_v6  ;;  %v1864_v60 = vadd.f32 1.0, %v3040_v8  ;;  %v2002_v2 = vmul.f32 %v3465_v51, %v1964_v57  ;;  %v1962_v4 = vld [vmem:[%s3144_s7 + $0xe8] sm:$0xff] }
 0x315   : > { %v3044_v15 = vpop.eup %3043  ;;  %2093 = vst.msk [vmem:[%s3487_s24 + $0x98] sm:$0xff] %vm2073_vm1, %v2060_v9  ;;  %v2058_v10 = vmul.f32 %v3474_v3, %v2020_v12  ;;  %v1862_v7 = vadd.f32 1.0, %v3042_v13  ;;  %v2000_v13 = vmul.f32 %v3465_v51, %v1962_v4 }
 0x316   : > { %v3046_v20 = vpop.eup %3045  ;;  %v2025_v22 = vadd.f32 %v3044_v15, %v1993_v5  ;;  %3063 = vrcp.f32 %v1864_v60 }
 0x317   : > { %v3048_v23 = vpop.eup %3047  ;;  %2091 = vst.msk [vmem:[%s3487_s24 + $0x88] sm:$0xff] %vm2073_vm1, %v2058_v10  ;;  %3065 = vrcp.f32 %v1862_v7  ;;  %v1867_v26 = vadd.f32 1.0, %v3046_v20 }
 0x318   : > { %v3050_v28 = vpop.eup %3049  ;;  %v2063_v21 = vmul.f32 %v3474_v3, %v2025_v22  ;;  %v1865_v45 = vadd.f32 1.0, %v3048_v23 }
 0x319   : > { %v3052_v31 = vpop.eup %3051  ;;  %v2023_v24 = vadd.f32 %v3050_v28, %v1991_v16  ;;  %3067 = vrcp.f32 %v1867_v26 }
 0x31a   : > { %v3054_v32 = vpop.eup %3053  ;;  %2096 = vst.msk [vmem:[%s3487_s24 + $0xb0] sm:$0xff] %vm2073_vm1, %v2063_v21  ;;  %3069 = vrcp.f32 %v1865_v45  ;;  %v1868_v18 = vadd.f32 1.0, %v3052_v31 }
 0x31b   : > { %v3056_v33 = vpop.eup %3055  ;;  %v2061_v34 = vmul.f32 %v3474_v3, %v2023_v24  ;;  %v2026_v36 = vadd.f32 %v3054_v32, %v1994_v25 }
 0x31c   : > { %v3058_v27 = vpop.eup %3057  ;;  %v2024_v39 = vadd.f32 %v3056_v33, %v1992_v29  ;;  %3071 = vrcp.f32 %v1868_v18 }
 0x31d   : > { %2094 = vst.msk [vmem:[%s3487_s24 + $0xa0] sm:$0xff] %vm2073_vm1, %v2061_v34  ;;  %v2064_v41 = vmul.f32 %v3474_v3, %v2026_v36  ;;  %v1866_v44 = vadd.f32 1.0, %v3058_v27 }
 0x31e   : > { %v3060_v47 = vpop.eup %3059  ;;  %v2062_v35 = vmul.f32 %v3474_v3, %v2024_v39 }
 0x31f   : > { %2097 = vst.msk [vmem:[%s3487_s24 + $0xb8] sm:$0xff] %vm2073_vm1, %v2064_v41  ;;  %v2029_v40 = vadd.f32 %v3060_v47, %v1997_v37  ;;  %3073 = vrcp.f32 %v1866_v44 }
 0x320   : > { %2095 = vst.msk [vmem:[%s3487_s24 + $0xa8] sm:$0xff] %vm2073_vm1, %v2062_v35 }
 0x321   : > { %v3062_v52 = vpop.eup %3061  ;;  %v2067_v11 = vmul.f32 %v3474_v3, %v2029_v40 }
 0x322   : > { %v2027_v17 = vadd.f32 %v3062_v52, %v1995_v48 }
 0x323   : > { %v3064_v55 = vpop.eup %3063  ;;  %2100 = vst.msk [vmem:[%s3487_s24 + $0xd0] sm:$0xff] %vm2073_vm1, %v2067_v11 }
 0x324   : > { %v3066_v58 = vpop.eup %3065  ;;  %v2065_v46 = vmul.f32 %v3474_v3, %v2027_v17  ;;  %v2030_v59 = vadd.f32 %v3064_v55, %v1998_v42 }
 0x325   : > { %v2028_v62 = vadd.f32 %v3066_v58, %v1996_v53 }
 0x326   : > { %v3068_v63 = vpop.eup %3067  ;;  %2098 = vst.msk [vmem:[%s3487_s24 + $0xc0] sm:$0xff] %vm2073_vm1, %v2065_v46  ;;  %v2068_v1 = vmul.f32 %v3474_v3, %v2030_v59 }
 0x327   : > { %v3070_v5 = vpop.eup %3069  ;;  %v2066_v50 = vmul.f32 %v3474_v3, %v2028_v62  ;;  %v2033_v6 = vadd.f32 %v3068_v63, %v2001_v56 }
 0x328   : > { %2101 = vst.msk [vmem:[%s3487_s24 + $0xd8] sm:$0xff] %vm2073_vm1, %v2068_v1  ;;  %v2031_v8 = vadd.f32 %v3070_v5, %v1999_v61 }
 0x329   : > { %v3072_v9 = vpop.eup %3071  ;;  %2099 = vst.msk [vmem:[%s3487_s24 + $0xc8] sm:$0xff] %vm2073_vm1, %v2066_v50  ;;  %v2071_v12 = vmul.f32 %v3474_v3, %v2033_v6 }
 0x32a   : > { %v2069_v14 = vmul.f32 %v3474_v3, %v2031_v8  ;;  %v2034_v60 = vadd.f32 %v3072_v9, %v2002_v2 }
 0x32b   : > { %2104 = vst.msk [vmem:[%s3487_s24 + $0xf0] sm:$0xff] %vm2073_vm1, %v2071_v12 }
 0x32c   : > { %v3074_v15 = vpop.eup %3073  ;;  %2102 = vst.msk [vmem:[%s3487_s24 + $0xe0] sm:$0xff] %vm2073_vm1, %v2069_v14  ;;  %v2072_v10 = vmul.f32 %v3474_v3, %v2034_v60 }
 0x32d   : > { %v2032_v16 = vadd.f32 %v3074_v15, %v2000_v13 }
 0x32e   : > { %2105 = vst.msk [vmem:[%s3487_s24 + $0xf8] sm:$0xff] %vm2073_vm1, %v2072_v10 }
 0x32f   : > { %v2070_v19 = vmul.f32 %v3474_v3, %v2032_v16 }
 0x331   : > { %2103 = vst.msk [vmem:[%s3487_s24 + $0xe8] sm:$0xff] %vm2073_vm1, %v2070_v19 }
 0x332 PF: > { %s15_s18 = sadd.s32 1, %s3083_s18  }
 0x333   : > { %p12_p4 = scmp.ge.s32.totalorder %s15_s18, 4  }
 0x335   :  { %14 = sbr.rel (!%p12_p4) target bundleno = 1 (0x1), region = 74 }

</bundles_post_ra>
